<compile_context>
chip_gen: v7x
topology: tpu7x:2x2x1
jax: 0.10.0
libtpu: 0.0.40
codegen_flags: <defaults>
</compile_context>

<pallas_src>
import math

import jax
import jax.numpy as jnp
from jax.experimental import pallas as pl
from jax.experimental.pallas import tpu as pltpu

# ----------------- small config (bert-base values in comments) --------------
BATCH = 2
SEQ = 8
HIDDEN = 32          # 768
HEADS = 4            # 12
HEAD_DIM = HIDDEN // HEADS
INTERMEDIATE = 64    # 3072
LAYERS = 2           # 12
VOCAB = 64           # 30522
TYPE_VOCAB = 2
MAX_POS = 16         # 512
NUM_CLASSES = 3
LN_EPS = 1e-12


# --------------------------- in-kernel helpers -------------------------------
def _ln(x, g, b):
    mu = jnp.mean(x, axis=-1, keepdims=True)
    xc = x - mu
    var = jnp.mean(xc * xc, axis=-1, keepdims=True)
    return xc * jax.lax.rsqrt(var + LN_EPS) * g + b


def _gelu(x):
    # TODO(synk): HF 'gelu' is exact erf-GELU; tanh approximation used for
    # guaranteed Mosaic lowering (numerically near-identical at inference).
    c = math.sqrt(2.0 / math.pi)
    return 0.5 * x * (1.0 + jnp.tanh(c * (x + 0.044715 * x * x * x)))


# ----------------------- the single fused BERT kernel ------------------------
# grid = (LAYERS,), "arbitrary".  Activation lives in x_sc (VMEM scratch) and
# never leaves the chip between layers.  mask_ref is a [M, M] additive mask
# combining HF key-padding (-10000) and block-diagonal batch isolation (-1e9).
def _bert_kernel(x0_ref, embg_ref, embb_ref, mask_ref,
                 wqkv_ref, bqkv_ref, wo_ref, bo_ref,
                 ln1g_ref, ln1b_ref, w1_ref, b1_ref, w2_ref, b2_ref,
                 ln2g_ref, ln2b_ref,
                 sel_ref, pw_ref, pb_ref, cw_ref, cb_ref, lab_ref,
                 logits_ref, loss_ref,
                 x_sc, ctx_sc):
    layer = pl.program_id(0)

    # ---- layer 0: embedding sum is precomputed in XLA; apply embedding LN ----
    @pl.when(layer == 0)
    def _():
        x_sc[...] = _ln(x0_ref[...], embg_ref[...], embb_ref[...])
        # dropout(0.1): identity in inference mode

    x = x_sc[...]                                           # [M, H] f32

    # ---- self-attention (packed QKV, all heads in-kernel, no concat) --------
    qkv = jnp.dot(x, wqkv_ref[...],
                  preferred_element_type=jnp.float32) + bqkv_ref[...]   # [M,3H]
    scale = 1.0 / math.sqrt(HEAD_DIM)
    mask = mask_ref[...]                                    # [M, M]
    for h in range(HEADS):                                  # static unroll
        lo = h * HEAD_DIM
        q = qkv[:, lo:lo + HEAD_DIM]
        k = qkv[:, HIDDEN + lo:HIDDEN + lo + HEAD_DIM]
        v = qkv[:, 2 * HIDDEN + lo:2 * HIDDEN + lo + HEAD_DIM]
        # Contract on last dim of both operands (q @ k^T without XLU transpose).
        s = jax.lax.dot_general(q, k, (((1,), (1,)), ((), ())),
                                preferred_element_type=jnp.float32)
        s = s * scale + mask                                # block-diag + padding
        m = jnp.max(s, axis=-1, keepdims=True)
        p = jnp.exp(s - m)
        p = p / jnp.sum(p, axis=-1, keepdims=True)          # exact divide
        ctx_sc[:, lo:lo + HEAD_DIM] = jnp.dot(
            p, v, preferred_element_type=jnp.float32)       # write slab, no concat
    ctx = ctx_sc[...]                                       # [M, H]

    attn_out = jnp.dot(ctx, wo_ref[...],
                       preferred_element_type=jnp.float32) + bo_ref[...]
    x1 = _ln(x + attn_out, ln1g_ref[...], ln1b_ref[...])    # residual fused in LN

    # ---- feed-forward -------------------------------------------------------
    h1 = _gelu(jnp.dot(x1, w1_ref[...],
                       preferred_element_type=jnp.float32) + b1_ref[...])
    ffn = jnp.dot(h1, w2_ref[...],
                  preferred_element_type=jnp.float32) + b2_ref[...]
    x2 = _ln(x1 + ffn, ln2g_ref[...], ln2b_ref[...])        # residual fused in LN
    x_sc[...] = x2                                          # stays resident in VMEM

    # ---- last layer: pooler + classifier + cross-entropy --------------------
    @pl.when(layer == LAYERS - 1)
    def _():
        # [CLS] rows selected via a tiny [B, M] selection matmul (no strided
        # sublane slicing needed).
        x_cls = jnp.dot(sel_ref[...], x2,
                        preferred_element_type=jnp.float32)             # [B, H]
        pooled = jnp.tanh(jnp.dot(x_cls, pw_ref[...],
                                  preferred_element_type=jnp.float32) + pb_ref[...])
        # dropout(0.1): identity in inference mode
        z = jnp.dot(pooled, cw_ref[...],
                    preferred_element_type=jnp.float32) + cb_ref[...]   # [B, C]
        logits_ref[...] = z
        m = jnp.max(z, axis=-1, keepdims=True)
        lse = jnp.log(jnp.sum(jnp.exp(z - m), axis=-1, keepdims=True)) + m
        onehot = (jax.lax.broadcasted_iota(jnp.int32, z.shape, 1)
                  == lab_ref[...]).astype(jnp.float32)
        nll = -jnp.sum(onehot * (z - lse), axis=-1, keepdims=True)      # [B, 1]
        loss_ref[...] = jnp.sum(nll, axis=0, keepdims=True) / z.shape[0]


def bert_stack(x0, mask, sel, labels, pp):
    M, H = x0.shape
    B = sel.shape[0]

    def full(shape):
        nd = len(shape)
        return pl.BlockSpec(shape, lambda l, _nd=nd: (0,) * _nd)

    def per_layer(shape):  # shape excludes the leading LAYERS axis (squeezed)
        nd = len(shape)
        return pl.BlockSpec((None,) + shape, lambda l, _nd=nd: (l,) + (0,) * _nd)

    in_specs = [
        full((M, H)),                         # x0 (summed embeddings)
        full((1, H)), full((1, H)),           # embedding LN gamma, beta
        full((M, M)),                         # combined additive attention mask
        per_layer((H, 3 * H)),                # wqkv
        per_layer((1, 3 * H)),                # bqkv
        per_layer((H, H)),                    # wo
        per_layer((1, H)),                    # bo
        per_layer((1, H)), per_layer((1, H)),         # ln1 gamma, beta
        per_layer((H, INTERMEDIATE)),                 # w1
        per_layer((1, INTERMEDIATE)),                 # b1
        per_layer((INTERMEDIATE, H)),                 # w2
        per_layer((1, H)),                            # b2
        per_layer((1, H)), per_layer((1, H)),         # ln2 gamma, beta
        full((B, M)),                         # [CLS] selection matrix
        full((H, H)),                         # pooler weight
        full((1, H)),                         # pooler bias
        full((H, NUM_CLASSES)),               # classifier weight
        full((1, NUM_CLASSES)),               # classifier bias
        full((B, 1)),                         # labels (int32)
    ]

    # TODO(synk): when scaling to real BERT-base on v7x, single-buffer the
    # resident weight specs, raise vmem_limit_bytes, and tile the FFN over
    # INTERMEDIATE; at toy size everything fits default scoped VMEM.
    logits, loss = pl.pallas_call(
        _bert_kernel,
        grid=(LAYERS,),
        in_specs=in_specs,
        out_specs=[
            pl.BlockSpec((B, NUM_CLASSES), lambda l: (0, 0)),
            pl.BlockSpec((1, 1), lambda l: (0, 0)),
        ],
        out_shape=(jax.ShapeDtypeStruct((B, NUM_CLASSES), jnp.float32),
                   jax.ShapeDtypeStruct((1, 1), jnp.float32)),
        scratch_shapes=[pltpu.VMEM((M, H), jnp.float32),   # resident activation
                        pltpu.VMEM((M, H), jnp.float32)],  # attention context slab
        compiler_params=pltpu.CompilerParams(
            dimension_semantics=("arbitrary",)),           # layers are sequential
    )(x0, pp["emb_g"], pp["emb_b"], mask,
      pp["wqkv"], pp["bqkv"], pp["wo"], pp["bo"],
      pp["ln1g"], pp["ln1b"], pp["w1"], pp["b1"],
      pp["w2"], pp["b2"], pp["ln2g"], pp["ln2b"],
      sel, pp["pool_w"], pp["pool_b"], pp["cls_w"], pp["cls_b"], labels)
    return logits, loss


# ------------------------------ parameters ----------------------------------
def init_params(key):
    counter = [0]

    def sub():
        counter[0] += 1
        return jax.random.fold_in(key, counter[0])

    def nrm(shape):
        return jax.random.normal(sub(), shape, jnp.float32) * 0.02

    params = {
        "word_emb": nrm((VOCAB, HIDDEN)),
        "pos_emb": nrm((MAX_POS, HIDDEN)),
        "type_emb": nrm((TYPE_VOCAB, HIDDEN)),
        "emb_ln_g": jnp.ones((HIDDEN,), jnp.float32),
        "emb_ln_b": jnp.zeros((HIDDEN,), jnp.float32),
        "layers": [],
        "pool_w": nrm((HIDDEN, HIDDEN)),
        "pool_b": jnp.zeros((HIDDEN,), jnp.float32),
        "cls_w": nrm((HIDDEN, NUM_CLASSES)),
        "cls_b": jnp.zeros((NUM_CLASSES,), jnp.float32),
    }
    for _ in range(LAYERS):
        params["layers"].append({
            "wq": nrm((HIDDEN, HIDDEN)), "bq": jnp.zeros((HIDDEN,), jnp.float32),
            "wk": nrm((HIDDEN, HIDDEN)), "bk": jnp.zeros((HIDDEN,), jnp.float32),
            "wv": nrm((HIDDEN, HIDDEN)), "bv": jnp.zeros((HIDDEN,), jnp.float32),
            "wo": nrm((HIDDEN, HIDDEN)), "bo": jnp.zeros((HIDDEN,), jnp.float32),
            "ln1_g": jnp.ones((HIDDEN,), jnp.float32),
            "ln1_b": jnp.zeros((HIDDEN,), jnp.float32),
            "w1": nrm((HIDDEN, INTERMEDIATE)),
            "b1": jnp.zeros((INTERMEDIATE,), jnp.float32),
            "w2": nrm((INTERMEDIATE, HIDDEN)),
            "b2": jnp.zeros((HIDDEN,), jnp.float32),
            "ln2_g": jnp.ones((HIDDEN,), jnp.float32),
            "ln2_b": jnp.zeros((HIDDEN,), jnp.float32),
        })
    return params


def prepare_params(p):
    """One-time weight packing (hoisted out of the forward pass)."""
    def stack(f):
        return jnp.stack([f(lp) for lp in p["layers"]], axis=0)

    return {
        "word_emb": p["word_emb"], "pos_emb": p["pos_emb"], "type_emb": p["type_emb"],
        "emb_g": p["emb_ln_g"].reshape(1, HIDDEN),
        "emb_b": p["emb_ln_b"].reshape(1, HIDDEN),
        "wqkv": stack(lambda q: jnp.concatenate([q["wq"], q["wk"], q["wv"]], axis=1)),
        "bqkv": stack(lambda q: jnp.concatenate([q["bq"], q["bk"], q["bv"]])
                      .reshape(1, 3 * HIDDEN)),
        "wo": stack(lambda q: q["wo"]),
        "bo": stack(lambda q: q["bo"].reshape(1, HIDDEN)),
        "ln1g": stack(lambda q: q["ln1_g"].reshape(1, HIDDEN)),
        "ln1b": stack(lambda q: q["ln1_b"].reshape(1, HIDDEN)),
        "w1": stack(lambda q: q["w1"]),
        "b1": stack(lambda q: q["b1"].reshape(1, INTERMEDIATE)),
        "w2": stack(lambda q: q["w2"]),
        "b2": stack(lambda q: q["b2"].reshape(1, HIDDEN)),
        "ln2g": stack(lambda q: q["ln2_g"].reshape(1, HIDDEN)),
        "ln2b": stack(lambda q: q["ln2_b"].reshape(1, HIDDEN)),
        "pool_w": p["pool_w"],
        "pool_b": p["pool_b"].reshape(1, HIDDEN),
        "cls_w": p["cls_w"],
        "cls_b": p["cls_b"].reshape(1, NUM_CLASSES),
    }


# ------------------------------- forward ------------------------------------
def bert_forward(pp, inp_ids, att_mask, token_ids, labels):
    B, S = inp_ids.shape
    M = B * S

    # Embedding table gathers stay in XLA (glue); LN + everything else is in
    # the single fused kernel.
    pos_ids = jnp.arange(S)
    we = jnp.take(pp["word_emb"], inp_ids, axis=0)              # [B, S, H]
    pe = jnp.take(pp["pos_emb"], pos_ids, axis=0)[None]         # [1, S, H]
    te = jnp.take(pp["type_emb"], token_ids, axis=0)            # [B, S, H]
    x0 = (we + pe + te).reshape(M, HIDDEN)

    # Combined additive mask [M, M]: HF key-padding (-10000) within a batch
    # element, -1e9 (exp underflows to 0) across batch elements so the single
    # [M, M] attention is exactly block-diagonal per batch.
    pad = (1.0 - att_mask.astype(jnp.float32)) * -10000.0       # [B, S]
    batch_ids = jnp.repeat(jnp.arange(B), S)                    # [M]
    same = batch_ids[:, None] == batch_ids[None, :]             # [M, M]
    mask = jnp.where(same, pad.reshape(1, M), jnp.float32(-1e9))

    # [CLS]-row selection matrix (rows 0, S, 2S, ...).
    sel = (jnp.arange(M)[None, :]
           == (jnp.arange(B) * S)[:, None]).astype(jnp.float32)  # [B, M]
    lab2 = labels.reshape(B, 1).astype(jnp.int32)

    logits, loss = bert_stack(x0, mask, sel, lab2, pp)
    return loss[0, 0], logits


# --------------------------------- main --------------------------------------
if __name__ == "__main__":
    root = jax.random.PRNGKey(0)
    kp, k1, k3 = jax.random.split(root, 3)
    params = init_params(kp)
    prepped = prepare_params(params)        # weight packing runs once, not per-forward

    inp_ids = jax.random.randint(k1, (BATCH, SEQ), 0, VOCAB, dtype=jnp.int32)
    att_mask = jnp.ones((BATCH, SEQ), jnp.int32).at[1, 6:].set(0)   # some padding
    token_ids = jnp.zeros((BATCH, SEQ), jnp.int32).at[:, 4:].set(1)
    labels = jax.random.randint(k3, (BATCH,), 0, NUM_CLASSES, dtype=jnp.int32)

    fwd = jax.jit(bert_forward)
    loss, logits = fwd(prepped, inp_ids, att_mask, token_ids, labels)
    jax.block_until_ready((loss, logits))
    assert logits.shape == (BATCH, NUM_CLASSES) and loss.shape == ()
    print("KERNEL_OK")
</pallas_src>

<mosaic_0001>
module attributes {stable_mosaic.version = 11 : i64} {
  func.func @_bert_kernel(%arg0: i32, %arg1: memref<16x32xf32, #tpu.memory_space<vmem>>, %arg2: memref<1x32xf32, #tpu.memory_space<vmem>>, %arg3: memref<1x32xf32, #tpu.memory_space<vmem>>, %arg4: memref<16x16xf32, #tpu.memory_space<vmem>>, %arg5: memref<1x32x96xf32, #tpu.memory_space<vmem>>, %arg6: memref<1x1x96xf32, #tpu.memory_space<vmem>>, %arg7: memref<1x32x32xf32, #tpu.memory_space<vmem>>, %arg8: memref<1x1x32xf32, #tpu.memory_space<vmem>>, %arg9: memref<1x1x32xf32, #tpu.memory_space<vmem>>, %arg10: memref<1x1x32xf32, #tpu.memory_space<vmem>>, %arg11: memref<1x32x64xf32, #tpu.memory_space<vmem>>, %arg12: memref<1x1x64xf32, #tpu.memory_space<vmem>>, %arg13: memref<1x64x32xf32, #tpu.memory_space<vmem>>, %arg14: memref<1x1x32xf32, #tpu.memory_space<vmem>>, %arg15: memref<1x1x32xf32, #tpu.memory_space<vmem>>, %arg16: memref<1x1x32xf32, #tpu.memory_space<vmem>>, %arg17: memref<2x16xf32, #tpu.memory_space<vmem>>, %arg18: memref<32x32xf32, #tpu.memory_space<vmem>>, %arg19: memref<1x32xf32, #tpu.memory_space<vmem>>, %arg20: memref<32x3xf32, #tpu.memory_space<vmem>>, %arg21: memref<1x3xf32, #tpu.memory_space<vmem>>, %arg22: memref<2x1xi32, #tpu.memory_space<vmem>>, %arg23: memref<2x3xf32, #tpu.memory_space<vmem>>, %arg24: memref<1x1xf32, #tpu.memory_space<vmem>>, %arg25: memref<16x32xf32, #tpu.memory_space<vmem>>, %arg26: memref<16x32xf32, #tpu.memory_space<vmem>>) attributes {dimension_semantics = [#tpu.dimension_semantics<arbitrary>], iteration_bounds = array<i64: 2>, scalar_prefetch = 0 : i64, scratch_operands = 2 : i64, tpu.core_type = #tpu.core_type<tc>, window_params = [{pipeline_mode = #tpu.pipeline_mode<synchronous>, transform_indices = @transform_0, window_bounds = array<i64: 16, 32>}, {pipeline_mode = #tpu.pipeline_mode<synchronous>, transform_indices = @transform_1, window_bounds = array<i64: 1, 32>}, {pipeline_mode = #tpu.pipeline_mode<synchronous>, transform_indices = @transform_2, window_bounds = array<i64: 1, 32>}, {pipeline_mode = #tpu.pipeline_mode<synchronous>, transform_indices = @transform_3, window_bounds = array<i64: 16, 16>}, {transform_indices = @transform_4, window_bounds = array<i64: 1, 32, 96>}, {transform_indices = @transform_5, window_bounds = array<i64: 1, 1, 96>}, {transform_indices = @transform_6, window_bounds = array<i64: 1, 32, 32>}, {transform_indices = @transform_7, window_bounds = array<i64: 1, 1, 32>}, {transform_indices = @transform_8, window_bounds = array<i64: 1, 1, 32>}, {transform_indices = @transform_9, window_bounds = array<i64: 1, 1, 32>}, {transform_indices = @transform_10, window_bounds = array<i64: 1, 32, 64>}, {transform_indices = @transform_11, window_bounds = array<i64: 1, 1, 64>}, {transform_indices = @transform_12, window_bounds = array<i64: 1, 64, 32>}, {transform_indices = @transform_13, window_bounds = array<i64: 1, 1, 32>}, {transform_indices = @transform_14, window_bounds = array<i64: 1, 1, 32>}, {transform_indices = @transform_15, window_bounds = array<i64: 1, 1, 32>}, {pipeline_mode = #tpu.pipeline_mode<synchronous>, transform_indices = @transform_16, window_bounds = array<i64: 2, 16>}, {pipeline_mode = #tpu.pipeline_mode<synchronous>, transform_indices = @transform_17, window_bounds = array<i64: 32, 32>}, {pipeline_mode = #tpu.pipeline_mode<synchronous>, transform_indices = @transform_18, window_bounds = array<i64: 1, 32>}, {pipeline_mode = #tpu.pipeline_mode<synchronous>, transform_indices = @transform_19, window_bounds = array<i64: 32, 3>}, {pipeline_mode = #tpu.pipeline_mode<synchronous>, transform_indices = @transform_20, window_bounds = array<i64: 1, 3>}, {pipeline_mode = #tpu.pipeline_mode<synchronous>, transform_indices = @transform_21, window_bounds = array<i64: 2, 1>}, {pipeline_mode = #tpu.pipeline_mode<synchronous>, transform_indices = @transform_22, window_bounds = array<i64: 2, 3>}, {pipeline_mode = #tpu.pipeline_mode<synchronous>, transform_indices = @transform_23, window_bounds = array<i64: 1, 1>}]} {
    %c0_i32 = arith.constant 0 : i32
    %0 = arith.cmpi eq, %arg0, %c0_i32 : i32
    %1 = arith.extui %0 : i1 to i32
    %c0_i32_0 = arith.constant 0 : i32
    %2 = arith.cmpi ne, %1, %c0_i32_0 : i32
    scf.if %2 {
      %c0_87 = arith.constant 0 : index
      %c0_88 = arith.constant 0 : index
      %173 = vector.load %arg1[%c0_87, %c0_88] : memref<16x32xf32, #tpu.memory_space<vmem>>, vector<16x32xf32>
      %c0_89 = arith.constant 0 : index
      %c0_90 = arith.constant 0 : index
      %174 = vector.load %arg2[%c0_89, %c0_90] : memref<1x32xf32, #tpu.memory_space<vmem>>, vector<1x32xf32>
      %c0_91 = arith.constant 0 : index
      %c0_92 = arith.constant 0 : index
      %175 = vector.load %arg3[%c0_91, %c0_92] : memref<1x32xf32, #tpu.memory_space<vmem>>, vector<1x32xf32>
      %cst_93 = arith.constant dense<0.000000e+00> : vector<16xf32>
      %176 = vector.multi_reduction <add>, %173, %cst_93 [1] : vector<16x32xf32> to vector<16xf32>
      %177 = vector.shape_cast %176 : vector<16xf32> to vector<16x1xf32>
      %cst_94 = arith.constant 3.200000e+01 : f32
      %178 = vector.broadcast %cst_94 : f32 to vector<16x1xf32>
      %179 = arith.divf %177, %178 : vector<16x1xf32>
      %180 = vector.broadcast %179 : vector<16x1xf32> to vector<16x32xf32>
      %181 = arith.subf %173, %180 : vector<16x32xf32>
      %182 = arith.mulf %181, %181 : vector<16x32xf32>
      %cst_95 = arith.constant dense<0.000000e+00> : vector<16xf32>
      %183 = vector.multi_reduction <add>, %182, %cst_95 [1] : vector<16x32xf32> to vector<16xf32>
      %184 = vector.shape_cast %183 : vector<16xf32> to vector<16x1xf32>
      %cst_96 = arith.constant 3.200000e+01 : f32
      %185 = vector.broadcast %cst_96 : f32 to vector<16x1xf32>
      %186 = arith.divf %184, %185 : vector<16x1xf32>
      %cst_97 = arith.constant 9.99999996E-13 : f32
      %187 = vector.broadcast %cst_97 : f32 to vector<16x1xf32>
      %188 = arith.addf %186, %187 : vector<16x1xf32>
      %189 = math.rsqrt %188 : vector<16x1xf32>
      %190 = vector.broadcast %189 : vector<16x1xf32> to vector<16x32xf32>
      %191 = arith.mulf %181, %190 : vector<16x32xf32>
      %192 = vector.broadcast %174 : vector<1x32xf32> to vector<16x32xf32>
      %193 = arith.mulf %191, %192 : vector<16x32xf32>
      %194 = vector.broadcast %175 : vector<1x32xf32> to vector<16x32xf32>
      %195 = arith.addf %193, %194 : vector<16x32xf32>
      %c0_98 = arith.constant 0 : index
      %c0_99 = arith.constant 0 : index
      %196 = vector.load %arg25[%c0_98, %c0_99] : memref<16x32xf32, #tpu.memory_space<vmem>>, vector<16x32xf32>
      tpu.vector_store %arg25[%c0_98, %c0_99], %195 {strides = array<i32>} : memref<16x32xf32, #tpu.memory_space<vmem>>, vector<16x32xf32>,
    } else {
    }
    %c0 = arith.constant 0 : index
    %c0_1 = arith.constant 0 : index
    %3 = vector.load %arg25[%c0, %c0_1] : memref<16x32xf32, #tpu.memory_space<vmem>>, vector<16x32xf32>
    %c0_2 = arith.constant 0 : index
    %c0_3 = arith.constant 0 : index
    %c0_4 = arith.constant 0 : index
    %4 = vector.load %arg5[%c0_2, %c0_3, %c0_4] : memref<1x32x96xf32, #tpu.memory_space<vmem>>, vector<1x32x96xf32>
    %5 = vector.shape_cast %4 : vector<1x32x96xf32> to vector<32x96xf32>
    %cst = arith.constant dense<0.000000e+00> : vector<16x96xf32>
    %6 = tpu.matmul %3, %5, %cst {dimension_numbers = #tpu.dot_dimension_numbers<[1], [0], [0], [1], [0, 0, 1, 1], [], []>} : vector<16x32xf32>, vector<32x96xf32>, vector<16x96xf32> -> vector<16x96xf32>
    %c0_5 = arith.constant 0 : index
    %c0_6 = arith.constant 0 : index
    %c0_7 = arith.constant 0 : index
    %7 = vector.load %arg6[%c0_5, %c0_6, %c0_7] : memref<1x1x96xf32, #tpu.memory_space<vmem>>, vector<1x1x96xf32>
    %8 = vector.shape_cast %7 : vector<1x1x96xf32> to vector<1x96xf32>
    %9 = vector.broadcast %8 : vector<1x96xf32> to vector<16x96xf32>
    %10 = arith.addf %6, %9 : vector<16x96xf32>
    %c0_8 = arith.constant 0 : index
    %c0_9 = arith.constant 0 : index
    %11 = vector.load %arg4[%c0_8, %c0_9] : memref<16x16xf32, #tpu.memory_space<vmem>>, vector<16x16xf32>
    %12 = vector.extract_strided_slice %10 {offsets = [0, 0], sizes = [16, 8], strides = [1, 1]} : vector<16x96xf32> to vector<16x8xf32>
    %13 = vector.extract_strided_slice %10 {offsets = [0, 32], sizes = [16, 8], strides = [1, 1]} : vector<16x96xf32> to vector<16x8xf32>
    %14 = vector.extract_strided_slice %10 {offsets = [0, 64], sizes = [16, 8], strides = [1, 1]} : vector<16x96xf32> to vector<16x8xf32>
    %cst_10 = arith.constant dense<0.000000e+00> : vector<16x16xf32>
    %15 = tpu.matmul %12, %13, %cst_10 {dimension_numbers = #tpu.dot_dimension_numbers<[1], [1], [0], [0], [0, 0, 1, 0], [], []>} : vector<16x8xf32>, vector<16x8xf32>, vector<16x16xf32> -> vector<16x16xf32>
    %cst_11 = arith.constant 0.353553385 : f32
    %16 = vector.broadcast %cst_11 : f32 to vector<16x16xf32>
    %17 = arith.mulf %15, %16 : vector<16x16xf32>
    %18 = arith.addf %17, %11 : vector<16x16xf32>
    %cst_12 = arith.constant dense<0xFF800000> : vector<16xf32>
    %19 = vector.multi_reduction <maximumf>, %18, %cst_12 [1] : vector<16x16xf32> to vector<16xf32>
    %20 = vector.shape_cast %19 : vector<16xf32> to vector<16x1xf32>
    %21 = vector.broadcast %20 : vector<16x1xf32> to vector<16x16xf32>
    %22 = arith.subf %18, %21 : vector<16x16xf32>
    %23 = math.exp %22 : vector<16x16xf32>
    %cst_13 = arith.constant dense<0.000000e+00> : vector<16xf32>
    %24 = vector.multi_reduction <add>, %23, %cst_13 [1] : vector<16x16xf32> to vector<16xf32>
    %25 = vector.shape_cast %24 : vector<16xf32> to vector<16x1xf32>
    %26 = vector.broadcast %25 : vector<16x1xf32> to vector<16x16xf32>
    %27 = arith.divf %23, %26 : vector<16x16xf32>
    %cst_14 = arith.constant dense<0.000000e+00> : vector<16x8xf32>
    %28 = tpu.matmul %27, %14, %cst_14 {dimension_numbers = #tpu.dot_dimension_numbers<[1], [0], [0], [1], [0, 0, 1, 1], [], []>} : vector<16x16xf32>, vector<16x8xf32>, vector<16x8xf32> -> vector<16x8xf32>
    %c0_15 = arith.constant 0 : index
    %c0_16 = arith.constant 0 : index
    %29 = vector.load %arg26[%c0_15, %c0_16] : memref<16x32xf32, #tpu.memory_space<vmem>>, vector<16x8xf32>
    tpu.vector_store %arg26[%c0_15, %c0_16], %28 {strides = array<i32>} : memref<16x32xf32, #tpu.memory_space<vmem>>, vector<16x8xf32>,
    %30 = vector.extract_strided_slice %10 {offsets = [0, 8], sizes = [16, 8], strides = [1, 1]} : vector<16x96xf32> to vector<16x8xf32>
    %31 = vector.extract_strided_slice %10 {offsets = [0, 40], sizes = [16, 8], strides = [1, 1]} : vector<16x96xf32> to vector<16x8xf32>
    %32 = vector.extract_strided_slice %10 {offsets = [0, 72], sizes = [16, 8], strides = [1, 1]} : vector<16x96xf32> to vector<16x8xf32>
    %cst_17 = arith.constant dense<0.000000e+00> : vector<16x16xf32>
    %33 = tpu.matmul %30, %31, %cst_17 {dimension_numbers = #tpu.dot_dimension_numbers<[1], [1], [0], [0], [0, 0, 1, 0], [], []>} : vector<16x8xf32>, vector<16x8xf32>, vector<16x16xf32> -> vector<16x16xf32>
    %cst_18 = arith.constant 0.353553385 : f32
    %34 = vector.broadcast %cst_18 : f32 to vector<16x16xf32>
    %35 = arith.mulf %33, %34 : vector<16x16xf32>
    %36 = arith.addf %35, %11 : vector<16x16xf32>
    %cst_19 = arith.constant dense<0xFF800000> : vector<16xf32>
    %37 = vector.multi_reduction <maximumf>, %36, %cst_19 [1] : vector<16x16xf32> to vector<16xf32>
    %38 = vector.shape_cast %37 : vector<16xf32> to vector<16x1xf32>
    %39 = vector.broadcast %38 : vector<16x1xf32> to vector<16x16xf32>
    %40 = arith.subf %36, %39 : vector<16x16xf32>
    %41 = math.exp %40 : vector<16x16xf32>
    %cst_20 = arith.constant dense<0.000000e+00> : vector<16xf32>
    %42 = vector.multi_reduction <add>, %41, %cst_20 [1] : vector<16x16xf32> to vector<16xf32>
    %43 = vector.shape_cast %42 : vector<16xf32> to vector<16x1xf32>
    %44 = vector.broadcast %43 : vector<16x1xf32> to vector<16x16xf32>
    %45 = arith.divf %41, %44 : vector<16x16xf32>
    %cst_21 = arith.constant dense<0.000000e+00> : vector<16x8xf32>
    %46 = tpu.matmul %45, %32, %cst_21 {dimension_numbers = #tpu.dot_dimension_numbers<[1], [0], [0], [1], [0, 0, 1, 1], [], []>} : vector<16x16xf32>, vector<16x8xf32>, vector<16x8xf32> -> vector<16x8xf32>
    %c0_22 = arith.constant 0 : index
    %c8 = arith.constant 8 : index
    %47 = vector.load %arg26[%c0_22, %c8] : memref<16x32xf32, #tpu.memory_space<vmem>>, vector<16x8xf32>
    tpu.vector_store %arg26[%c0_22, %c8], %46 {strides = array<i32>} : memref<16x32xf32, #tpu.memory_space<vmem>>, vector<16x8xf32>,
    %48 = vector.extract_strided_slice %10 {offsets = [0, 16], sizes = [16, 8], strides = [1, 1]} : vector<16x96xf32> to vector<16x8xf32>
    %49 = vector.extract_strided_slice %10 {offsets = [0, 48], sizes = [16, 8], strides = [1, 1]} : vector<16x96xf32> to vector<16x8xf32>
    %50 = vector.extract_strided_slice %10 {offsets = [0, 80], sizes = [16, 8], strides = [1, 1]} : vector<16x96xf32> to vector<16x8xf32>
    %cst_23 = arith.constant dense<0.000000e+00> : vector<16x16xf32>
    %51 = tpu.matmul %48, %49, %cst_23 {dimension_numbers = #tpu.dot_dimension_numbers<[1], [1], [0], [0], [0, 0, 1, 0], [], []>} : vector<16x8xf32>, vector<16x8xf32>, vector<16x16xf32> -> vector<16x16xf32>
    %cst_24 = arith.constant 0.353553385 : f32
    %52 = vector.broadcast %cst_24 : f32 to vector<16x16xf32>
    %53 = arith.mulf %51, %52 : vector<16x16xf32>
    %54 = arith.addf %53, %11 : vector<16x16xf32>
    %cst_25 = arith.constant dense<0xFF800000> : vector<16xf32>
    %55 = vector.multi_reduction <maximumf>, %54, %cst_25 [1] : vector<16x16xf32> to vector<16xf32>
    %56 = vector.shape_cast %55 : vector<16xf32> to vector<16x1xf32>
    %57 = vector.broadcast %56 : vector<16x1xf32> to vector<16x16xf32>
    %58 = arith.subf %54, %57 : vector<16x16xf32>
    %59 = math.exp %58 : vector<16x16xf32>
    %cst_26 = arith.constant dense<0.000000e+00> : vector<16xf32>
    %60 = vector.multi_reduction <add>, %59, %cst_26 [1] : vector<16x16xf32> to vector<16xf32>
    %61 = vector.shape_cast %60 : vector<16xf32> to vector<16x1xf32>
    %62 = vector.broadcast %61 : vector<16x1xf32> to vector<16x16xf32>
    %63 = arith.divf %59, %62 : vector<16x16xf32>
    %cst_27 = arith.constant dense<0.000000e+00> : vector<16x8xf32>
    %64 = tpu.matmul %63, %50, %cst_27 {dimension_numbers = #tpu.dot_dimension_numbers<[1], [0], [0], [1], [0, 0, 1, 1], [], []>} : vector<16x16xf32>, vector<16x8xf32>, vector<16x8xf32> -> vector<16x8xf32>
    %c0_28 = arith.constant 0 : index
    %c16 = arith.constant 16 : index
    %65 = vector.load %arg26[%c0_28, %c16] : memref<16x32xf32, #tpu.memory_space<vmem>>, vector<16x8xf32>
    tpu.vector_store %arg26[%c0_28, %c16], %64 {strides = array<i32>} : memref<16x32xf32, #tpu.memory_space<vmem>>, vector<16x8xf32>,
    %66 = vector.extract_strided_slice %10 {offsets = [0, 24], sizes = [16, 8], strides = [1, 1]} : vector<16x96xf32> to vector<16x8xf32>
    %67 = vector.extract_strided_slice %10 {offsets = [0, 56], sizes = [16, 8], strides = [1, 1]} : vector<16x96xf32> to vector<16x8xf32>
    %68 = vector.extract_strided_slice %10 {offsets = [0, 88], sizes = [16, 8], strides = [1, 1]} : vector<16x96xf32> to vector<16x8xf32>
    %cst_29 = arith.constant dense<0.000000e+00> : vector<16x16xf32>
    %69 = tpu.matmul %66, %67, %cst_29 {dimension_numbers = #tpu.dot_dimension_numbers<[1], [1], [0], [0], [0, 0, 1, 0], [], []>} : vector<16x8xf32>, vector<16x8xf32>, vector<16x16xf32> -> vector<16x16xf32>
    %cst_30 = arith.constant 0.353553385 : f32
    %70 = vector.broadcast %cst_30 : f32 to vector<16x16xf32>
    %71 = arith.mulf %69, %70 : vector<16x16xf32>
    %72 = arith.addf %71, %11 : vector<16x16xf32>
    %cst_31 = arith.constant dense<0xFF800000> : vector<16xf32>
    %73 = vector.multi_reduction <maximumf>, %72, %cst_31 [1] : vector<16x16xf32> to vector<16xf32>
    %74 = vector.shape_cast %73 : vector<16xf32> to vector<16x1xf32>
    %75 = vector.broadcast %74 : vector<16x1xf32> to vector<16x16xf32>
    %76 = arith.subf %72, %75 : vector<16x16xf32>
    %77 = math.exp %76 : vector<16x16xf32>
    %cst_32 = arith.constant dense<0.000000e+00> : vector<16xf32>
    %78 = vector.multi_reduction <add>, %77, %cst_32 [1] : vector<16x16xf32> to vector<16xf32>
    %79 = vector.shape_cast %78 : vector<16xf32> to vector<16x1xf32>
    %80 = vector.broadcast %79 : vector<16x1xf32> to vector<16x16xf32>
    %81 = arith.divf %77, %80 : vector<16x16xf32>
    %cst_33 = arith.constant dense<0.000000e+00> : vector<16x8xf32>
    %82 = tpu.matmul %81, %68, %cst_33 {dimension_numbers = #tpu.dot_dimension_numbers<[1], [0], [0], [1], [0, 0, 1, 1], [], []>} : vector<16x16xf32>, vector<16x8xf32>, vector<16x8xf32> -> vector<16x8xf32>
    %c0_34 = arith.constant 0 : index
    %c24 = arith.constant 24 : index
    %83 = vector.load %arg26[%c0_34, %c24] : memref<16x32xf32, #tpu.memory_space<vmem>>, vector<16x8xf32>
    tpu.vector_store %arg26[%c0_34, %c24], %82 {strides = array<i32>} : memref<16x32xf32, #tpu.memory_space<vmem>>, vector<16x8xf32>,
    %c0_35 = arith.constant 0 : index
    %c0_36 = arith.constant 0 : index
    %84 = vector.load %arg26[%c0_35, %c0_36] : memref<16x32xf32, #tpu.memory_space<vmem>>, vector<16x32xf32>
    %c0_37 = arith.constant 0 : index
    %c0_38 = arith.constant 0 : index
    %c0_39 = arith.constant 0 : index
    %85 = vector.load %arg7[%c0_37, %c0_38, %c0_39] : memref<1x32x32xf32, #tpu.memory_space<vmem>>, vector<1x32x32xf32>
    %86 = vector.shape_cast %85 : vector<1x32x32xf32> to vector<32x32xf32>
    %cst_40 = arith.constant dense<0.000000e+00> : vector<16x32xf32>
    %87 = tpu.matmul %84, %86, %cst_40 {dimension_numbers = #tpu.dot_dimension_numbers<[1], [0], [0], [1], [0, 0, 1, 1], [], []>} : vector<16x32xf32>, vector<32x32xf32>, vector<16x32xf32> -> vector<16x32xf32>
    %c0_41 = arith.constant 0 : index
    %c0_42 = arith.constant 0 : index
    %c0_43 = arith.constant 0 : index
    %88 = vector.load %arg8[%c0_41, %c0_42, %c0_43] : memref<1x1x32xf32, #tpu.memory_space<vmem>>, vector<1x1x32xf32>
    %89 = vector.shape_cast %88 : vector<1x1x32xf32> to vector<1x32xf32>
    %90 = vector.broadcast %89 : vector<1x32xf32> to vector<16x32xf32>
    %91 = arith.addf %87, %90 : vector<16x32xf32>
    %92 = arith.addf %3, %91 : vector<16x32xf32>
    %c0_44 = arith.constant 0 : index
    %c0_45 = arith.constant 0 : index
    %c0_46 = arith.constant 0 : index
    %93 = vector.load %arg9[%c0_44, %c0_45, %c0_46] : memref<1x1x32xf32, #tpu.memory_space<vmem>>, vector<1x1x32xf32>
    %94 = vector.shape_cast %93 : vector<1x1x32xf32> to vector<1x32xf32>
    %c0_47 = arith.constant 0 : index
    %c0_48 = arith.constant 0 : index
    %c0_49 = arith.constant 0 : index
    %95 = vector.load %arg10[%c0_47, %c0_48, %c0_49] : memref<1x1x32xf32, #tpu.memory_space<vmem>>, vector<1x1x32xf32>
    %96 = vector.shape_cast %95 : vector<1x1x32xf32> to vector<1x32xf32>
    %cst_50 = arith.constant dense<0.000000e+00> : vector<16xf32>
    %97 = vector.multi_reduction <add>, %92, %cst_50 [1] : vector<16x32xf32> to vector<16xf32>
    %98 = vector.shape_cast %97 : vector<16xf32> to vector<16x1xf32>
    %cst_51 = arith.constant 3.200000e+01 : f32
    %99 = vector.broadcast %cst_51 : f32 to vector<16x1xf32>
    %100 = arith.divf %98, %99 : vector<16x1xf32>
    %101 = vector.broadcast %100 : vector<16x1xf32> to vector<16x32xf32>
    %102 = arith.subf %92, %101 : vector<16x32xf32>
    %103 = arith.mulf %102, %102 : vector<16x32xf32>
    %cst_52 = arith.constant dense<0.000000e+00> : vector<16xf32>
    %104 = vector.multi_reduction <add>, %103, %cst_52 [1] : vector<16x32xf32> to vector<16xf32>
    %105 = vector.shape_cast %104 : vector<16xf32> to vector<16x1xf32>
    %cst_53 = arith.constant 3.200000e+01 : f32
    %106 = vector.broadcast %cst_53 : f32 to vector<16x1xf32>
    %107 = arith.divf %105, %106 : vector<16x1xf32>
    %cst_54 = arith.constant 9.99999996E-13 : f32
    %108 = vector.broadcast %cst_54 : f32 to vector<16x1xf32>
    %109 = arith.addf %107, %108 : vector<16x1xf32>
    %110 = math.rsqrt %109 : vector<16x1xf32>
    %111 = vector.broadcast %110 : vector<16x1xf32> to vector<16x32xf32>
    %112 = arith.mulf %102, %111 : vector<16x32xf32>
    %113 = vector.broadcast %94 : vector<1x32xf32> to vector<16x32xf32>
    %114 = arith.mulf %112, %113 : vector<16x32xf32>
    %115 = vector.broadcast %96 : vector<1x32xf32> to vector<16x32xf32>
    %116 = arith.addf %114, %115 : vector<16x32xf32>
    %c0_55 = arith.constant 0 : index
    %c0_56 = arith.constant 0 : index
    %c0_57 = arith.constant 0 : index
    %117 = vector.load %arg11[%c0_55, %c0_56, %c0_57] : memref<1x32x64xf32, #tpu.memory_space<vmem>>, vector<1x32x64xf32>
    %118 = vector.shape_cast %117 : vector<1x32x64xf32> to vector<32x64xf32>
    %cst_58 = arith.constant dense<0.000000e+00> : vector<16x64xf32>
    %119 = tpu.matmul %116, %118, %cst_58 {dimension_numbers = #tpu.dot_dimension_numbers<[1], [0], [0], [1], [0, 0, 1, 1], [], []>} : vector<16x32xf32>, vector<32x64xf32>, vector<16x64xf32> -> vector<16x64xf32>
    %c0_59 = arith.constant 0 : index
    %c0_60 = arith.constant 0 : index
    %c0_61 = arith.constant 0 : index
    %120 = vector.load %arg12[%c0_59, %c0_60, %c0_61] : memref<1x1x64xf32, #tpu.memory_space<vmem>>, vector<1x1x64xf32>
    %121 = vector.shape_cast %120 : vector<1x1x64xf32> to vector<1x64xf32>
    %122 = vector.broadcast %121 : vector<1x64xf32> to vector<16x64xf32>
    %123 = arith.addf %119, %122 : vector<16x64xf32>
    %cst_62 = arith.constant 5.000000e-01 : f32
    %124 = vector.broadcast %cst_62 : f32 to vector<16x64xf32>
    %125 = arith.mulf %124, %123 : vector<16x64xf32>
    %cst_63 = arith.constant 4.471500e-02 : f32
    %126 = vector.broadcast %cst_63 : f32 to vector<16x64xf32>
    %127 = arith.mulf %126, %123 : vector<16x64xf32>
    %128 = arith.mulf %127, %123 : vector<16x64xf32>
    %129 = arith.mulf %128, %123 : vector<16x64xf32>
    %130 = arith.addf %123, %129 : vector<16x64xf32>
    %cst_64 = arith.constant 0.797884583 : f32
    %131 = vector.broadcast %cst_64 : f32 to vector<16x64xf32>
    %132 = arith.mulf %131, %130 : vector<16x64xf32>
    %133 = math.tanh %132 : vector<16x64xf32>
    %cst_65 = arith.constant 1.000000e+00 : f32
    %134 = vector.broadcast %cst_65 : f32 to vector<16x64xf32>
    %135 = arith.addf %134, %133 : vector<16x64xf32>
    %136 = arith.mulf %125, %135 : vector<16x64xf32>
    %c0_66 = arith.constant 0 : index
    %c0_67 = arith.constant 0 : index
    %c0_68 = arith.constant 0 : index
    %137 = vector.load %arg13[%c0_66, %c0_67, %c0_68] : memref<1x64x32xf32, #tpu.memory_space<vmem>>, vector<1x64x32xf32>
    %138 = vector.shape_cast %137 : vector<1x64x32xf32> to vector<64x32xf32>
    %cst_69 = arith.constant dense<0.000000e+00> : vector<16x32xf32>
    %139 = tpu.matmul %136, %138, %cst_69 {dimension_numbers = #tpu.dot_dimension_numbers<[1], [0], [0], [1], [0, 0, 1, 1], [], []>} : vector<16x64xf32>, vector<64x32xf32>, vector<16x32xf32> -> vector<16x32xf32>
    %c0_70 = arith.constant 0 : index
    %c0_71 = arith.constant 0 : index
    %c0_72 = arith.constant 0 : index
    %140 = vector.load %arg14[%c0_70, %c0_71, %c0_72] : memref<1x1x32xf32, #tpu.memory_space<vmem>>, vector<1x1x32xf32>
    %141 = vector.shape_cast %140 : vector<1x1x32xf32> to vector<1x32xf32>
    %142 = vector.broadcast %141 : vector<1x32xf32> to vector<16x32xf32>
    %143 = arith.addf %139, %142 : vector<16x32xf32>
    %144 = arith.addf %116, %143 : vector<16x32xf32>
    %c0_73 = arith.constant 0 : index
    %c0_74 = arith.constant 0 : index
    %c0_75 = arith.constant 0 : index
    %145 = vector.load %arg15[%c0_73, %c0_74, %c0_75] : memref<1x1x32xf32, #tpu.memory_space<vmem>>, vector<1x1x32xf32>
    %146 = vector.shape_cast %145 : vector<1x1x32xf32> to vector<1x32xf32>
    %c0_76 = arith.constant 0 : index
    %c0_77 = arith.constant 0 : index
    %c0_78 = arith.constant 0 : index
    %147 = vector.load %arg16[%c0_76, %c0_77, %c0_78] : memref<1x1x32xf32, #tpu.memory_space<vmem>>, vector<1x1x32xf32>
    %148 = vector.shape_cast %147 : vector<1x1x32xf32> to vector<1x32xf32>
    %cst_79 = arith.constant dense<0.000000e+00> : vector<16xf32>
    %149 = vector.multi_reduction <add>, %144, %cst_79 [1] : vector<16x32xf32> to vector<16xf32>
    %150 = vector.shape_cast %149 : vector<16xf32> to vector<16x1xf32>
    %cst_80 = arith.constant 3.200000e+01 : f32
    %151 = vector.broadcast %cst_80 : f32 to vector<16x1xf32>
    %152 = arith.divf %150, %151 : vector<16x1xf32>
    %153 = vector.broadcast %152 : vector<16x1xf32> to vector<16x32xf32>
    %154 = arith.subf %144, %153 : vector<16x32xf32>
    %155 = arith.mulf %154, %154 : vector<16x32xf32>
    %cst_81 = arith.constant dense<0.000000e+00> : vector<16xf32>
    %156 = vector.multi_reduction <add>, %155, %cst_81 [1] : vector<16x32xf32> to vector<16xf32>
    %157 = vector.shape_cast %156 : vector<16xf32> to vector<16x1xf32>
    %cst_82 = arith.constant 3.200000e+01 : f32
    %158 = vector.broadcast %cst_82 : f32 to vector<16x1xf32>
    %159 = arith.divf %157, %158 : vector<16x1xf32>
    %cst_83 = arith.constant 9.99999996E-13 : f32
    %160 = vector.broadcast %cst_83 : f32 to vector<16x1xf32>
    %161 = arith.addf %159, %160 : vector<16x1xf32>
    %162 = math.rsqrt %161 : vector<16x1xf32>
    %163 = vector.broadcast %162 : vector<16x1xf32> to vector<16x32xf32>
    %164 = arith.mulf %154, %163 : vector<16x32xf32>
    %165 = vector.broadcast %146 : vector<1x32xf32> to vector<16x32xf32>
    %166 = arith.mulf %164, %165 : vector<16x32xf32>
    %167 = vector.broadcast %148 : vector<1x32xf32> to vector<16x32xf32>
    %168 = arith.addf %166, %167 : vector<16x32xf32>
    %c0_84 = arith.constant 0 : index
    %c0_85 = arith.constant 0 : index
    %169 = vector.load %arg25[%c0_84, %c0_85] : memref<16x32xf32, #tpu.memory_space<vmem>>, vector<16x32xf32>
    tpu.vector_store %arg25[%c0_84, %c0_85], %168 {strides = array<i32>} : memref<16x32xf32, #tpu.memory_space<vmem>>, vector<16x32xf32>,
    %c1_i32 = arith.constant 1 : i32
    %170 = arith.cmpi eq, %arg0, %c1_i32 : i32
    %171 = arith.extui %170 : i1 to i32
    %c0_i32_86 = arith.constant 0 : i32
    %172 = arith.cmpi ne, %171, %c0_i32_86 : i32
    scf.if %172 {
      %c0_87 = arith.constant 0 : index
      %c0_88 = arith.constant 0 : index
      %173 = vector.load %arg17[%c0_87, %c0_88] : memref<2x16xf32, #tpu.memory_space<vmem>>, vector<2x16xf32>
      %cst_89 = arith.constant dense<0.000000e+00> : vector<2x32xf32>
      %174 = tpu.matmul %173, %168, %cst_89 {dimension_numbers = #tpu.dot_dimension_numbers<[1], [0], [0], [1], [0, 0, 1, 1], [], []>} : vector<2x16xf32>, vector<16x32xf32>, vector<2x32xf32> -> vector<2x32xf32>
      %c0_90 = arith.constant 0 : index
      %c0_91 = arith.constant 0 : index
      %175 = vector.load %arg18[%c0_90, %c0_91] : memref<32x32xf32, #tpu.memory_space<vmem>>, vector<32x32xf32>
      %cst_92 = arith.constant dense<0.000000e+00> : vector<2x32xf32>
      %176 = tpu.matmul %174, %175, %cst_92 {dimension_numbers = #tpu.dot_dimension_numbers<[1], [0], [0], [1], [0, 0, 1, 1], [], []>} : vector<2x32xf32>, vector<32x32xf32>, vector<2x32xf32> -> vector<2x32xf32>
      %c0_93 = arith.constant 0 : index
      %c0_94 = arith.constant 0 : index
      %177 = vector.load %arg19[%c0_93, %c0_94] : memref<1x32xf32, #tpu.memory_space<vmem>>, vector<1x32xf32>
      %178 = vector.broadcast %177 : vector<1x32xf32> to vector<2x32xf32>
      %179 = arith.addf %176, %178 : vector<2x32xf32>
      %180 = math.tanh %179 : vector<2x32xf32>
      %c0_95 = arith.constant 0 : index
      %c0_96 = arith.constant 0 : index
      %181 = vector.load %arg20[%c0_95, %c0_96] : memref<32x3xf32, #tpu.memory_space<vmem>>, vector<32x3xf32>
      %cst_97 = arith.constant dense<0.000000e+00> : vector<2x3xf32>
      %182 = tpu.matmul %180, %181, %cst_97 {dimension_numbers = #tpu.dot_dimension_numbers<[1], [0], [0], [1], [0, 0, 1, 1], [], []>} : vector<2x32xf32>, vector<32x3xf32>, vector<2x3xf32> -> vector<2x3xf32>
      %c0_98 = arith.constant 0 : index
      %c0_99 = arith.constant 0 : index
      %183 = vector.load %arg21[%c0_98, %c0_99] : memref<1x3xf32, #tpu.memory_space<vmem>>, vector<1x3xf32>
      %184 = vector.broadcast %183 : vector<1x3xf32> to vector<2x3xf32>
      %185 = arith.addf %182, %184 : vector<2x3xf32>
      %c0_100 = arith.constant 0 : index
      %c0_101 = arith.constant 0 : index
      %186 = vector.load %arg23[%c0_100, %c0_101] : memref<2x3xf32, #tpu.memory_space<vmem>>, vector<2x3xf32>
      tpu.vector_store %arg23[%c0_100, %c0_101], %185 {strides = array<i32>} : memref<2x3xf32, #tpu.memory_space<vmem>>, vector<2x3xf32>,
      %cst_102 = arith.constant dense<0xFF800000> : vector<2xf32>
      %187 = vector.multi_reduction <maximumf>, %185, %cst_102 [1] : vector<2x3xf32> to vector<2xf32>
      %188 = vector.shape_cast %187 : vector<2xf32> to vector<2x1xf32>
      %189 = vector.broadcast %188 : vector<2x1xf32> to vector<2x3xf32>
      %190 = arith.subf %185, %189 : vector<2x3xf32>
      %191 = math.exp %190 : vector<2x3xf32>
      %cst_103 = arith.constant dense<0.000000e+00> : vector<2xf32>
      %192 = vector.multi_reduction <add>, %191, %cst_103 [1] : vector<2x3xf32> to vector<2xf32>
      %193 = vector.shape_cast %192 : vector<2xf32> to vector<2x1xf32>
      %194 = math.log %193 : vector<2x1xf32>
      %195 = arith.addf %194, %188 : vector<2x1xf32>
      %196 = tpu.iota {dimensions = array<i32: 1>} : vector<2x3xi32>
      %c0_104 = arith.constant 0 : index
      %c0_105 = arith.constant 0 : index
      %197 = vector.load %arg22[%c0_104, %c0_105] : memref<2x1xi32, #tpu.memory_space<vmem>>, vector<2x1xi32>
      %198 = vector.broadcast %197 : vector<2x1xi32> to vector<2x3xi32>
      %199 = arith.cmpi eq, %196, %198 : vector<2x3xi32>
      %200 = arith.extui %199 : vector<2x3xi1> to vector<2x3xi32>
      %201 = arith.sitofp %200 : vector<2x3xi32> to vector<2x3xf32>
      %202 = vector.broadcast %195 : vector<2x1xf32> to vector<2x3xf32>
      %203 = arith.subf %185, %202 : vector<2x3xf32>
      %204 = arith.mulf %201, %203 : vector<2x3xf32>
      %cst_106 = arith.constant dense<0.000000e+00> : vector<2xf32>
      %205 = vector.multi_reduction <add>, %204, %cst_106 [1] : vector<2x3xf32> to vector<2xf32>
      %206 = vector.shape_cast %205 : vector<2xf32> to vector<2x1xf32>
      %cst_107 = arith.constant 0.000000e+00 : f32
      %207 = vector.broadcast %cst_107 : f32 to vector<2x1xf32>
      %208 = arith.subf %207, %206 : vector<2x1xf32>
      %cst_108 = arith.constant dense<0.000000e+00> : vector<1xf32>
      %209 = vector.multi_reduction <add>, %208, %cst_108 [0] : vector<2x1xf32> to vector<1xf32>
      %210 = vector.shape_cast %209 : vector<1xf32> to vector<1x1xf32>
      %cst_109 = arith.constant 2.000000e+00 : f32
      %211 = vector.broadcast %cst_109 : f32 to vector<1x1xf32>
      %212 = arith.divf %210, %211 : vector<1x1xf32>
      %c0_110 = arith.constant 0 : index
      %c0_111 = arith.constant 0 : index
      %213 = vector.load %arg24[%c0_110, %c0_111] : memref<1x1xf32, #tpu.memory_space<vmem>>, vector<1x1xf32>
      tpu.vector_store %arg24[%c0_110, %c0_111], %212 {strides = array<i32>} : memref<1x1xf32, #tpu.memory_space<vmem>>, vector<1x1xf32>,
    } else {
    }
    return
  }
  func.func @transform_0(%arg0: i32) -> (i32, i32) {
    %c0_i32 = arith.constant 0 : i32
    %c0_i32_0 = arith.constant 0 : i32
    %c0_i32_1 = arith.constant 0 : i32
    return %c0_i32, %c0_i32_0 : i32, i32
  }
  func.func @transform_1(%arg0: i32) -> (i32, i32) {
    %c0_i32 = arith.constant 0 : i32
    %c0_i32_0 = arith.constant 0 : i32
    %c0_i32_1 = arith.constant 0 : i32
    return %c0_i32, %c0_i32_0 : i32, i32
  }
  func.func @transform_2(%arg0: i32) -> (i32, i32) {
    %c0_i32 = arith.constant 0 : i32
    %c0_i32_0 = arith.constant 0 : i32
    %c0_i32_1 = arith.constant 0 : i32
    return %c0_i32, %c0_i32_0 : i32, i32
  }
  func.func @transform_3(%arg0: i32) -> (i32, i32) {
    %c0_i32 = arith.constant 0 : i32
    %c0_i32_0 = arith.constant 0 : i32
    %c0_i32_1 = arith.constant 0 : i32
    return %c0_i32, %c0_i32_0 : i32, i32
  }
  func.func @transform_4(%arg0: i32) -> (i32, i32, i32) {
    %c0_i32 = arith.constant 0 : i32
    %c0_i32_0 = arith.constant 0 : i32
    %c0_i32_1 = arith.constant 0 : i32
    return %arg0, %c0_i32, %c0_i32_0 : i32, i32, i32
  }
  func.func @transform_5(%arg0: i32) -> (i32, i32, i32) {
    %c0_i32 = arith.constant 0 : i32
    %c0_i32_0 = arith.constant 0 : i32
    %c0_i32_1 = arith.constant 0 : i32
    return %arg0, %c0_i32, %c0_i32_0 : i32, i32, i32
  }
  func.func @transform_6(%arg0: i32) -> (i32, i32, i32) {
    %c0_i32 = arith.constant 0 : i32
    %c0_i32_0 = arith.constant 0 : i32
    %c0_i32_1 = arith.constant 0 : i32
    return %arg0, %c0_i32, %c0_i32_0 : i32, i32, i32
  }
  func.func @transform_7(%arg0: i32) -> (i32, i32, i32) {
    %c0_i32 = arith.constant 0 : i32
    %c0_i32_0 = arith.constant 0 : i32
    %c0_i32_1 = arith.constant 0 : i32
    return %arg0, %c0_i32, %c0_i32_0 : i32, i32, i32
  }
  func.func @transform_8(%arg0: i32) -> (i32, i32, i32) {
    %c0_i32 = arith.constant 0 : i32
    %c0_i32_0 = arith.constant 0 : i32
    %c0_i32_1 = arith.constant 0 : i32
    return %arg0, %c0_i32, %c0_i32_0 : i32, i32, i32
  }
  func.func @transform_9(%arg0: i32) -> (i32, i32, i32) {
    %c0_i32 = arith.constant 0 : i32
    %c0_i32_0 = arith.constant 0 : i32
    %c0_i32_1 = arith.constant 0 : i32
    return %arg0, %c0_i32, %c0_i32_0 : i32, i32, i32
  }
  func.func @transform_10(%arg0: i32) -> (i32, i32, i32) {
    %c0_i32 = arith.constant 0 : i32
    %c0_i32_0 = arith.constant 0 : i32
    %c0_i32_1 = arith.constant 0 : i32
    return %arg0, %c0_i32, %c0_i32_0 : i32, i32, i32
  }
  func.func @transform_11(%arg0: i32) -> (i32, i32, i32) {
    %c0_i32 = arith.constant 0 : i32
    %c0_i32_0 = arith.constant 0 : i32
    %c0_i32_1 = arith.constant 0 : i32
    return %arg0, %c0_i32, %c0_i32_0 : i32, i32, i32
  }
  func.func @transform_12(%arg0: i32) -> (i32, i32, i32) {
    %c0_i32 = arith.constant 0 : i32
    %c0_i32_0 = arith.constant 0 : i32
    %c0_i32_1 = arith.constant 0 : i32
    return %arg0, %c0_i32, %c0_i32_0 : i32, i32, i32
  }
  func.func @transform_13(%arg0: i32) -> (i32, i32, i32) {
    %c0_i32 = arith.constant 0 : i32
    %c0_i32_0 = arith.constant 0 : i32
    %c0_i32_1 = arith.constant 0 : i32
    return %arg0, %c0_i32, %c0_i32_0 : i32, i32, i32
  }
  func.func @transform_14(%arg0: i32) -> (i32, i32, i32) {
    %c0_i32 = arith.constant 0 : i32
    %c0_i32_0 = arith.constant 0 : i32
    %c0_i32_1 = arith.constant 0 : i32
    return %arg0, %c0_i32, %c0_i32_0 : i32, i32, i32
  }
  func.func @transform_15(%arg0: i32) -> (i32, i32, i32) {
    %c0_i32 = arith.constant 0 : i32
    %c0_i32_0 = arith.constant 0 : i32
    %c0_i32_1 = arith.constant 0 : i32
    return %arg0, %c0_i32, %c0_i32_0 : i32, i32, i32
  }
  func.func @transform_16(%arg0: i32) -> (i32, i32) {
    %c0_i32 = arith.constant 0 : i32
    %c0_i32_0 = arith.constant 0 : i32
    %c0_i32_1 = arith.constant 0 : i32
    return %c0_i32, %c0_i32_0 : i32, i32
  }
  func.func @transform_17(%arg0: i32) -> (i32, i32) {
    %c0_i32 = arith.constant 0 : i32
    %c0_i32_0 = arith.constant 0 : i32
    %c0_i32_1 = arith.constant 0 : i32
    return %c0_i32, %c0_i32_0 : i32, i32
  }
  func.func @transform_18(%arg0: i32) -> (i32, i32) {
    %c0_i32 = arith.constant 0 : i32
    %c0_i32_0 = arith.constant 0 : i32
    %c0_i32_1 = arith.constant 0 : i32
    return %c0_i32, %c0_i32_0 : i32, i32
  }
  func.func @transform_19(%arg0: i32) -> (i32, i32) {
    %c0_i32 = arith.constant 0 : i32
    %c0_i32_0 = arith.constant 0 : i32
    %c0_i32_1 = arith.constant 0 : i32
    return %c0_i32, %c0_i32_0 : i32, i32
  }
  func.func @transform_20(%arg0: i32) -> (i32, i32) {
    %c0_i32 = arith.constant 0 : i32
    %c0_i32_0 = arith.constant 0 : i32
    %c0_i32_1 = arith.constant 0 : i32
    return %c0_i32, %c0_i32_0 : i32, i32
  }
  func.func @transform_21(%arg0: i32) -> (i32, i32) {
    %c0_i32 = arith.constant 0 : i32
    %c0_i32_0 = arith.constant 0 : i32
    %c0_i32_1 = arith.constant 0 : i32
    return %c0_i32, %c0_i32_0 : i32, i32
  }
  func.func @transform_22(%arg0: i32) -> (i32, i32) {
    %c0_i32 = arith.constant 0 : i32
    %c0_i32_0 = arith.constant 0 : i32
    %c0_i32_1 = arith.constant 0 : i32
    return %c0_i32, %c0_i32_0 : i32, i32
  }
  func.func @transform_23(%arg0: i32) -> (i32, i32) {
    %c0_i32 = arith.constant 0 : i32
    %c0_i32_0 = arith.constant 0 : i32
    %c0_i32_1 = arith.constant 0 : i32
    return %c0_i32, %c0_i32_0 : i32, i32
  }
}

</mosaic_0001>

<bundles_post_ra>
// kernel: bert_forward.1
= control target key start
LH: loop header
LB: loop body
LE: loop exit
PB: predicated region body
PF: predicated region fallthrough
CT: control target
= control target key end

     0   :  { %s3825_s0 = inlined_call_operand.vmem [shape: f32[16,32], index: 0, kind: input, shape index: {}]   ;;  %s3826_s1 = inlined_call_operand.vmem [shape: f32[1,32], index: 1, kind: input, shape index: {}]   ;;  %s3827_s2 = inlined_call_operand.vmem [shape: f32[1,32], index: 2, kind: input, shape index: {}]   ;;  %s3828_s3 = inlined_call_operand.vmem [shape: f32[16,16], index: 3, kind: input, shape index: {}]   ;;  %s3829_s4 = inlined_call_operand.vmem [shape: f32[2,32,96], index: 4, kind: input, shape index: {}]   ;;  %s3830_s5 = inlined_call_operand.vmem [shape: f32[2,1,96], index: 5, kind: input, shape index: {}]   ;;  %s3831_s6 = inlined_call_operand.vmem [shape: f32[2,32,32], index: 6, kind: input, shape index: {}]   ;;  %s3832_s7 = inlined_call_operand.vmem [shape: f32[2,1,32], index: 7, kind: input, shape index: {}]   ;;  %s3833_s8 = inlined_call_operand.vmem [shape: f32[2,1,32], index: 8, kind: input, shape index: {}]   ;;  %s3834_s9 = inlined_call_operand.vmem [shape: f32[2,1,32], index: 9, kind: input, shape index: {}]   ;;  %s3835_s10 = inlined_call_operand.vmem [shape: f32[2,32,64], index: 10, kind: input, shape index: {}]   ;;  %s3836_s11 = inlined_call_operand.vmem [shape: f32[2,1,64], index: 11, kind: input, shape index: {}]   ;;  %s3837_s12 = inlined_call_operand.vmem [shape: f32[2,64,32], index: 12, kind: input, shape index: {}]   ;;  %s3838_s13 = inlined_call_operand.vmem [shape: f32[2,1,32], index: 13, kind: input, shape index: {}]   ;;  %s3839_s14 = inlined_call_operand.vmem [shape: f32[2,1,32], index: 14, kind: input, shape index: {}]   ;;  %s3840_s15 = inlined_call_operand.vmem [shape: f32[2,1,32], index: 15, kind: input, shape index: {}]   ;;  %s3841_s16 = inlined_call_operand.vmem [shape: f32[2,16], index: 16, kind: input, shape index: {}]   ;;  %s3842_s17 = inlined_call_operand.vmem [shape: f32[32,32], index: 17, kind: input, shape index: {}]   ;;  %s3843_s18 = inlined_call_operand.vmem [shape: f32[1,32], index: 18, kind: input, shape index: {}]   ;;  %s3844_s19 = inlined_call_operand.vmem [shape: f32[32,3], index: 19, kind: input, shape index: {}]   ;;  %s3845_s20 = inlined_call_operand.vmem [shape: f32[1,3], index: 20, kind: input, shape index: {}]   ;;  %s3846_s21 = inlined_call_operand.vmem [shape: s32[2,1], index: 21, kind: input, shape index: {}]   ;;  %s3847_s22 = inlined_call_operand.hbm [shape: f32[2,3], index: 22, kind: output, shape index: {0}]   ;;  %s3848_s23 = inlined_call_operand.hbm [shape: f32[1,1], index: 23, kind: output, shape index: {1}]  }
   0x1   :  { %3855 = sst [smem:[#allocation11_spill]] %s3825_s0 }
   0x2   :  { %3856 = sst [smem:[#allocation12_spill]] %s3826_s1 }
   0x3   :  { %3857 = sst [smem:[#allocation13_spill]] %s3827_s2 }
   0x4   :  { %3858 = sst [smem:[#allocation14_spill]] %s3828_s3 }
   0x5   :  { %3859 = sst [smem:[#allocation15_spill]] %s3829_s4 }
   0x6   :  { %3860 = sst [smem:[#allocation16_spill]] %s3830_s5 }
   0x7   :  { %3861 = sst [smem:[#allocation17_spill]] %s3831_s6 }
   0x8   :  { %3862 = sst [smem:[#allocation18_spill]] %s3832_s7 }
   0x9   :  { %3863 = sst [smem:[#allocation19_spill]] %s3841_s16 }
   0xa   :  { %3864 = sst [smem:[#allocation20_spill]] %s3843_s18 }
   0xb   :  { %3865 = sst [smem:[#allocation21_spill]] %s3844_s19 }
   0xc   :  { %3866 = sst [smem:[#allocation22_spill]] %s3845_s20 }
   0xd   :  { %3867 = sst [smem:[#allocation23_spill]] %s3846_s21 }
   0xe   :  { %3868 = sst [smem:[#allocation24_spill]] %s3847_s22 }
   0xf   :  { %3869 = sst [smem:[#allocation25_spill]] %s3848_s23 }
  0x10   :  { %29 = vsyncpa [#allocation5], 0 }
  0x11   :  { %30 = vsyncpa [#allocation7], 0  ;;  %s3451_s4 = smov 0  }
  0x12 LB: > { %3870 = sst [smem:[#allocation10_spill]] %s3309_s4  ;;  %s3457_s30 = sadd.s32 4294967295, %s3309_s4   ;;  %s3309_s4 = sphi %s3451_s4, %s36_s4  }
  0x13   : > { %p2733_p0 = scmp.ge.s32.totalorder %s3309_s4, 1  ;;  %p726_p1 = scmp.lt.s32.totalorder %s3309_s4, 3 }
  0x15   : > { %p727_p2 = pnand %p2733_p0, %p726_p1 }
  0x16   : > { %p824_p3 = scmp.lt.s32.totalorder (!%p727_p2), %s3457_s30, 1  ;;  %s3872_s7 = sld [smem:[#allocation15_spill]] (!%p727_p2) }
  0x17   : > { %730 = sbr.rel (%p727_p2) target bundleno = 5218 (0x1462), region = 108  ;;  %s3873_s0 = sld [smem:[#allocation17_spill]] (!%p727_p2) }
  0x18   : > { %s3874_s21 = sld [smem:[#allocation18_spill]] (!%p727_p2)  ;;  %p2742_p4 = scmp.ne.s32.totalorder (!%p727_p2), %s3457_s30, 0 }
  0x1e   : > { %s3463_s24 = scalar_select %p824_p3, %s3457_s30, 1 }
  0x1f   : > { %871 = sbr.rel (%p2742_p4) target bundleno = 356 (0x164), region = 112  ;;  %s3875_s22 = sld [smem:[#allocation11_spill]] (!%p2742_p4)  ;;  %vm876_vm0 = vcmask (!%p2742_p4), 261120  }
  0x20   : > { %s2798_s25 = sshll.u32 %s3463_s24, 5  ;;  %s839_s20 = scalar_lea.vmem %s3874_s21, %s3463_s24 }
  0x21   : > { %s3473_s28 = scalar_lea.vmem %s3872_s7, %s2798_s25  ;;  %s3478_s4 = scalar_lea.vmem %s3873_s0, %s2798_s25 }
  0x22   : > { %s3495_s7 = scalar_lea.vmem %s3835_s10, %s2798_s25  ;;  %s853_s0 = scalar_lea.vmem %s3836_s11, %s3463_s24 }
  0x23   : > { %s2801_s2 = sshll.u32 %s3463_s24, 6  ;;  %s861_s5 = scalar_lea.vmem %s3838_s13, %s3463_s24 }
  0x24   : > { %s3505_s23 = scalar_lea.vmem %s3837_s12, %s2801_s2  ;;  %s864_s6 = scalar_lea.vmem %s3839_s14, %s3463_s24 }
  0x25   : > { %s867_s16 = scalar_lea.vmem %s3840_s15, %s3463_s24  ;;  %v872_v0 = vld [vmem:[%s3875_s22] sm:$0xff] (!%p2742_p4)  ;;  %v873_v1 = vld [vmem:[%s3875_s22 + $0x8] sm:$0xff] (!%p2742_p4)  ;;  %s3876_s19 = sld [smem:[#allocation12_spill]] (!%p2742_p4) }
  0x26   : > { %v877_v2 = vsel %vm876_vm0, %v872_v0, 0.0  ;;  %v880_v3 = vsel %vm876_vm0, %v873_v1, 0.0  ;;  %s3877_s27 = sld [smem:[#allocation13_spill]] }
  0x27   : > { %878 = vadd.xlane.f32.xlu0 %v877_v2 }
  0x2b   : > { %881 = vadd.xlane.f32.xlu0 %v880_v3  ;;  %v2743_v21 = vld [vmem:[%s3876_s19] ss:$0 sm:$0xff] }
  0x2c   : > { %v2744_v23 = vld [vmem:[%s3877_s27] ss:$0 sm:$0xff] }
  0xb4   : > { %v879_v4 = vpop.xlane.xlu0 %878 }
  0xb5   : > { %v884_v5 = vmul.f32 0.03125, %v879_v4 }
  0xb7   : > { %v886_v6 = vsub.f32 %v872_v0, %v884_v5 }
  0xb8   : > { %v882_v7 = vpop.xlane.xlu0 %881 }
  0xb9   : > { %v885_v8 = vmul.f32 0.03125, %v882_v7  ;;  %v888_v9 = vmul.f32 %v886_v6, %v886_v6 }
  0xbb   : > { %v887_v10 = vsub.f32 %v873_v1, %v885_v8  ;;  %v890_v11 = vsel %vm876_vm0, %v888_v9, 0.0 }
  0xbc   : > { %891 = vadd.xlane.f32.xlu1 %v890_v11 }
  0xbd   : > { %v889_v12 = vmul.f32 %v887_v10, %v887_v10 }
  0xbf   : > { %v893_v13 = vsel %vm876_vm0, %v889_v12, 0.0 }
  0xc0   : > { %894 = vadd.xlane.f32.xlu1 %v893_v13 }
 0x149   : > { %v892_v14 = vpop.xlane.xlu1 %891 }
 0x14a   : > { %v896_v15 = vmul.f32 0.03125, %v892_v14 }
 0x14c   : > { %v898_v16 = vadd.f32 1e-12, %v896_v15 }
 0x14d   : > { %v895_v17 = vpop.xlane.xlu1 %894 }
 0x14e   : > { %3147 = vrsqrt.f32 %v898_v16  ;;  %v897_v18 = vmul.f32 0.03125, %v895_v17 }
 0x150   : > { %v899_v19 = vadd.f32 1e-12, %v897_v18 }
 0x152   : > { %3149 = vrsqrt.f32 %v899_v19 }
 0x158   : > { %v3148_v20 = vpop.eup %3147 }
 0x159   : > { %v902_v22 = vmul.f32 %v3148_v20, %v886_v6 }
 0x15b   : > { %v910_v24 = vmul.f32 %v2743_v21, %v902_v22 }
 0x15c   : > { %v3150_v25 = vpop.eup %3149 }
 0x15d   : > { %v918_v26 = vadd.f32 %v2744_v23, %v910_v24  ;;  %v903_v27 = vmul.f32 %v3150_v25, %v887_v10 }
 0x15f   : > { %920 = vst.msk [vmem:[#allocation2] sm:$0xff] %vm876_vm0, %v918_v26  ;;  %v911_v28 = vmul.f32 %v2743_v21, %v903_v27 }
 0x161   : > { %v919_v29 = vadd.f32 %v2744_v23, %v911_v28 }
 0x163   : > { %921 = vst.msk [vmem:[#allocation2 + $0x8] sm:$0xff] %vm876_vm0, %v919_v29 }
 0x164 PF: > { %v924_v30 = vld [vmem:[%s3473_s28] sm:$0xff]  ;;  %v925_v31 = vld [vmem:[%s3473_s28 + $0x8] sm:$0xff]  ;;  %v926_v32 = vld [vmem:[%s3473_s28 + $0x10] sm:$0xff]  ;;  %vm935_vm1 = vcmask 261120   ;;  %s3878_s2 = sld [smem:[#allocation16_spill]]  ;;  %vm1025_vm2 = vcmask 64512  }
 0x165   : > { %v3012_v33 = vpack.c.bf16 %v925_v31, %v924_v30  ;;  %v927_v34 = vld [vmem:[%s3473_s28 + $0x18] sm:$0xff]  ;;  %s3311_s28 = smov 120   ;;  %s3312_s26 = smov 96   ;;  %vm3571_vm3 = vmpackc.low %vm1025_vm2, %vm1025_vm2  ;;  %vm1113_vm4 = vcmask 130048   ;;  %vm1437_vm5 = vcmask 130112   ;;  %vm1652_vm6 = vcmask 195712  }
 0x166   : > { %v3542_v35 = vld [vmem:[#allocation2] sm:$0xff]  ;;  %v3016_v36 = vpack.c.bf16 %v927_v34, %v926_v32  ;;  %s3313_s18 = smov 88   ;;  %s3882_s25 = sld [smem:[#allocation14_spill]]  ;;  %vm1867_vm7 = vcmask 261312   ;;  %vm2136_vm8 = vcmask 523264  }
 0x167   : > { %2883 = vmatprep.mubr.msk.f32.mxu1 %vm935_vm1, %v3542_v35  ;;  %3013 = vmatprep.subr.bf16.mxu1 %v3012_v33  ;;  %s3314_s3 = smov 64   ;;  %s3320_s19 = smov 48  }
 0x168   : > { %3015 = vmatpush3.bf16.msra.mxu1 %v3012_v33  ;;  %s3321_s1 = smov 8   ;;  %s3322_s27 = smov 40  }
 0x169   : > { %3017 = vmatprep.subr.bf16.mxu1 %v3016_v36  ;;  %s3323_s29 = smov 16   ;;  %p2785_p5 = scmp.ne.s32.totalorder %s3457_s30, 1 }
 0x16a   : > { %v3546_v37 = vld [vmem:[#allocation2 + $0x8] sm:$0xff]  ;;  %s3879_s21 = scalar_lea.vmem %s3878_s2, %s3463_s24  ;;  %s3315_s2 = smov 80   ;;  %vm3326_vm9 = vmmov (!%p2785_p5), 0   ;;  %vm2513_vm10 = vcmask (!%p2785_p5), 17408   ;;  %vm2542_vm12 = vcmask (!%p2785_p5), 1041408   ;;  %vm2552_vm13 = vcmask (!%p2785_p5), 0  }
 0x16b   : > { %v2745_v38 = vld [vmem:[%s3879_s21] ss:$0 sm:$0xff]  ;;  %s3316_s21 = smov 56  }
 0x16c   : > { %3019 = vmatpush3.bf16.msra.mxu1 %v3016_v36  ;;  %v3590_v56 = vld [vmem:[%s3882_s25 + $0x8] sm:$0xff]  ;;  %v3595_v59 = vld [vmem:[%s3882_s25] sm:$0xff] }
 0x16f   : > { %2884 = vmatmul.mubr.msk.f32.vlgmr.msra.gmra.mrb[0].mxu1 %vm935_vm1, %v3546_v37 }
 0x242   : > { %v2885_v39 = vpop.f32.mrb[0].mxu1 }
 0x243   : > { %v3555_v40 = vadd.f32 %v2885_v39, %v2745_v38  ;;  %v1008_v41 = vpop.f32.mrb[1].mxu1 }
 0x244   : > { %v3557_v42 = vadd.f32 %v2745_v38, %v1008_v41 }
 0x246   : > { %1225 = vrot.lane.b32.xlu1 %v3557_v42, %s3311_s28  ;;  %2890 = vmatprep.mubr.msk.f32.mxu1 %vm1025_vm2, %v3557_v42  ;;  %v3564_v43 = vpack.i.bf16 %v3555_v40, %v3557_v42 }
 0x248   : > { %3152 = vrot.lane.b32.xlu0 %v3564_v43, %s3312_s26  ;;  %s3318_s26 = smov 72  }
 0x24a   : > { %1227 = vrot.lane.b32.xlu1 %v3555_v40, %s3311_s28  ;;  %s3317_s28 = smov 112  }
 0x24c   : > { %3157 = vrot.lane.b32.xlu0 %v3564_v43, %s3313_s18  ;;  %s3319_s18 = smov 104  }
 0x2b8   : > { %v1226_v53 = vpop.permute.xlu1 %1225 }
 0x2ba   : > { %v3153_v44 = vpop.permute.xlu0 %3152 }
 0x2bb   : > { %v3155_v45 = vunpack.i.h.bf16 %v3153_v44  ;;  %v3154_v46 = vunpack.i.l.bf16 %v3153_v44 }
 0x2bc   : > { %v1228_v54 = vpop.permute.xlu1 %1227 }
 0x2bd   : > { %v3020_v48 = vpack.c.bf16 %v3155_v45, %v3154_v46 }
 0x2be   : > { %v3158_v49 = vpop.permute.xlu0 %3157 }
 0x2bf   : > { %v3160_v50 = vunpack.i.h.bf16 %v3158_v49  ;;  %v3159_v51 = vunpack.i.l.bf16 %v3158_v49  ;;  %3022 = vmatprep.subr.msk.bf16.mxu1 %vm3571_vm3, %v3020_v48 }
 0x2c0   : > { %3025 = vmatpush3.bf16.xpose.msk.msra.mxu1 %vm3571_vm3, %v3020_v48 }
 0x2c1   : > { %v3030_v52 = vpack.c.bf16 %v3160_v50, %v3159_v51 }
 0x2c3   : > { %3032 = vmatprep.subr.msk.bf16.mxu1 %vm3571_vm3, %v3030_v52 }
 0x2c7   : > { %2891 = vmatmul.mubr.msk.f32.vlgmr.msra.gmra.mrb[2].mxu1 %vm1025_vm2, %v3555_v40 }
 0x2c8   : > { %3035 = vmatpush3.bf16.xpose.msk.msra.mxu1 %vm3571_vm3, %v3030_v52  ;;  %2904 = vmatprep.mubr.msk.f32.mxu1 %vm1025_vm2, %v1226_v53 }
 0x2cf   : > { %2905 = vmatmul.mubr.msk.f32.vlgmr.msra.gmra.mrb[4].mxu1 %vm1025_vm2, %v1228_v54 }
 0x39a   : > { %v2892_v55 = vpop.f32.mrb[2].mxu1 }
 0x39b   : > { %v1110_v57 = vmul.f32 0.35355338, %v2892_v55  ;;  %v1100_v58 = vpop.f32.mrb[3].mxu1 }
 0x39c   : > { %v1109_v60 = vmul.f32 0.35355338, %v1100_v58 }
 0x39d   : > { %v1112_v61 = vadd.f32 %v1110_v57, %v3590_v56 }
 0x39e   : > { %v1111_v62 = vadd.f32 %v1109_v60, %v3595_v59 }
 0x39f   : > { %v1117_v63 = vsel %vm1113_vm4, %v1112_v61, -inf }
 0x3a0   : > { %1118 = vmax.xlane.f32.xlu1 %v1117_v63  ;;  %v1114_v0 = vsel %vm1113_vm4, %v1111_v62, -inf }
 0x3a1   : > { %1115 = vmax.xlane.f32.xlu0 %v1114_v0 }
 0x3a2   : > { %v2906_v1 = vpop.f32.mrb[4].mxu1 }
 0x3a3   : > { %v1307_v2 = vpop.f32.mrb[5].mxu1  ;;  %v1317_v3 = vmul.f32 0.35355338, %v2906_v1 }
 0x3a4   : > { %v1316_v4 = vmul.f32 0.35355338, %v1307_v2 }
 0x3a5   : > { %v1319_v7 = vadd.f32 %v1317_v3, %v3590_v56 }
 0x3a6   : > { %v1318_v5 = vadd.f32 %v1316_v4, %v3595_v59 }
 0x3a7   : > { %v1323_v8 = vsel %vm1113_vm4, %v1319_v7, -inf }
 0x3a8   : > { %v1320_v6 = vsel %vm1113_vm4, %v1318_v5, -inf }
 0x3a9   : > { %1321 = vmax.xlane.f32.xlu0 %v1320_v6 }
 0x3ad   : > { %1324 = vmax.xlane.f32.xlu0 %v1323_v8 }
 0x3b1   : > { %3162 = vrot.lane.b32.xlu1 %v3564_v43, %s3314_s3  ;;  %s3324_s3 = smov 24  }
 0x42d   : > { %v1119_v9 = vpop.xlane.xlu1 %1118 }
 0x42e   : > { %v1121_v10 = vsub.f32 %v1112_v61, %v1119_v9  ;;  %v1116_v11 = vpop.xlane.xlu0 %1115 }
 0x42f   : > { %v1120_v12 = vsub.f32 %v1111_v62, %v1116_v11 }
 0x430   : > { %v1124_v13 = vmul.f32 1.442695, %v1121_v10 }
 0x431   : > { %v1122_v14 = vmul.f32 1.442695, %v1120_v12  ;;  %v3163_v15 = vpop.permute.xlu1 %3162 }
 0x432   : > { %3191 = vpow2.f32 %v1124_v13  ;;  %v3165_v16 = vunpack.i.h.bf16 %v3163_v15  ;;  %v3164_v17 = vunpack.i.l.bf16 %v3163_v15 }
 0x433   : > { %3193 = vpow2.f32 %v1122_v14 }
 0x434   : > { %v3026_v18 = vpack.c.bf16 %v3165_v16, %v3164_v17 }
 0x436   : > { %3027 = vmatprep.subr.bf16.mxu0 %v3026_v18  ;;  %v1322_v19 = vpop.xlane.xlu0 %1321 }
 0x437   : > { %3029 = vmatpush3.bf16.msra.mxu0 %v3026_v18  ;;  %v1326_v29 = vsub.f32 %v1318_v5, %v1322_v19 }
 0x439   : > { %v1328_v30 = vmul.f32 1.442695, %v1326_v29 }
 0x43a   : > { %v1325_v20 = vpop.xlane.xlu0 %1324 }
 0x43b   : > { %v1327_v21 = vsub.f32 %v1319_v7, %v1325_v20 }
 0x43c   : > { %v3192_v22 = vpop.eup %3191 }
 0x43d   : > { %v3194_v23 = vpop.eup %3193  ;;  %v1330_v24 = vmul.f32 1.442695, %v1327_v21  ;;  %v1129_v25 = vsel %vm1113_vm4, %v3192_v22, 0.0 }
 0x43e   : > { %1130 = vadd.xlane.f32.xlu0 %v1129_v25  ;;  %v1126_v26 = vsel %vm1113_vm4, %v3194_v23, 0.0 }
 0x43f   : > { %3195 = vpow2.f32 %v1330_v24  ;;  %1127 = vadd.xlane.f32.xlu1 %v1126_v26 }
 0x440   : > { %3197 = vpow2.f32 %v1328_v30 }
 0x449   : > { %v3196_v27 = vpop.eup %3195 }
 0x44a   : > { %v1335_v28 = vsel %vm1113_vm4, %v3196_v27, 0.0  ;;  %v3198_v31 = vpop.eup %3197 }
 0x44b   : > { %1336 = vadd.xlane.f32.xlu0 %v1335_v28  ;;  %v1332_v32 = vsel %vm1113_vm4, %v3198_v31, 0.0 }
 0x450   : > { %3172 = vrot.lane.b32.xlu1 %v3564_v43, %s3315_s2 }
 0x461   : > { %3167 = vrot.lane.b32.xlu0 %v3564_v43, %s3316_s21 }
 0x465   : > { %1442 = vrot.lane.b32.xlu0 %v3555_v40, %s3317_s28 }
 0x474   : > { %1333 = vadd.xlane.f32.xlu1 %v1332_v32 }
 0x485   : > { %1440 = vrot.lane.b32.xlu1 %v3557_v42, %s3317_s28  ;;  %s3889_s28 = sld [smem:[#allocation22_spill]] (!%p2785_p5) }
 0x4cb   : > { %v1131_v33 = vpop.xlane.xlu0 %1130 }
 0x4cc   : > { %3199 = vrcp.f32 %v1131_v33  ;;  %v1128_v34 = vpop.xlane.xlu1 %1127 }
 0x4cd   : > { %3201 = vrcp.f32 %v1128_v34 }
 0x4d0   : > { %v3173_v45 = vpop.permute.xlu1 %3172 }
 0x4d1   : > { %v3175_v48 = vunpack.i.h.bf16 %v3173_v45  ;;  %v3174_v49 = vunpack.i.l.bf16 %v3173_v45 }
 0x4d3   : > { %v3040_v53 = vpack.c.bf16 %v3175_v48, %v3174_v49 }
 0x4d6   : > { %v3200_v36 = vpop.eup %3199 }
 0x4d7   : > { %v3202_v38 = vpop.eup %3201  ;;  %v1135_v44 = vmul.f32 %v3200_v36, %v3192_v22 }
 0x4d8   : > { %v1337_v39 = vpop.xlane.xlu0 %1336  ;;  %v1133_v41 = vmul.f32 %v3202_v38, %v3194_v23 }
 0x4d9   : > { %3203 = vrcp.f32 %v1337_v39 }
 0x4da   : > { %2897 = vmatprep.mubr.msk.f32.mxu0 %vm1113_vm4, %v1133_v41 }
 0x4db   : > { %2898 = vmatmul.mubr.msk.f32.vlgmr.msra.gmra.mrb[0].mxu0 %vm1113_vm4, %v1135_v44 }
 0x4dc   : > { %v3168_v46 = vpop.permute.xlu0 %3167 }
 0x4dd   : > { %v3170_v50 = vunpack.i.h.bf16 %v3168_v46  ;;  %v3169_v51 = vunpack.i.l.bf16 %v3168_v46 }
 0x4df   : > { %v3036_v52 = vpack.c.bf16 %v3170_v50, %v3169_v51 }
 0x4e0   : > { %v1443_v62 = vpop.permute.xlu0 %1442 }
 0x4e1   : > { %3037 = vmatprep.subr.bf16.mxu0 %v3036_v52 }
 0x4e2   : > { %3039 = vmatpush3.bf16.msra.mxu0 %v3036_v52 }
 0x4e3   : > { %3042 = vmatprep.subr.msk.bf16.mxu0 %vm3571_vm3, %v3040_v53  ;;  %v3204_v55 = vpop.eup %3203 }
 0x4e4   : > { %v1341_v60 = vmul.f32 %v3204_v55, %v3196_v27 }
 0x501   : > { %v1334_v54 = vpop.xlane.xlu1 %1333 }
 0x502   : > { %3205 = vrcp.f32 %v1334_v54 }
 0x505   : > { %v1441_v61 = vpop.permute.xlu1 %1440 }
 0x50c   : > { %v3206_v57 = vpop.eup %3205 }
 0x50d   : > { %v1339_v58 = vmul.f32 %v3206_v57, %v3198_v31 }
 0x50f   : > { %2911 = vmatprep.mubr.msk.f32.mxu0 %vm1113_vm4, %v1339_v58 }
 0x510   : > { %2912 = vmatmul.mubr.msk.f32.vlgmr.msra.gmra.mrb[2].mxu0 %vm1113_vm4, %v1341_v60 }
 0x511   : > { %3045 = vmatpush3.bf16.xpose.msk.msra.mxu0 %vm3571_vm3, %v3040_v53  ;;  %2918 = vmatprep.mubr.msk.f32.mxu0 %vm1025_vm2, %v1441_v61 }
 0x518   : > { %2919 = vmatmul.mubr.msk.f32.vlgmr.msra.gmra.mrb[4].mxu0 %vm1025_vm2, %v1443_v62 }
 0x5ae   : > { %v2899_v63 = vpop.f32.mrb[0].mxu0 }
 0x5af   : > { %1224 = vst.msk [vmem:[#allocation3 + $0x8] sm:$0xff] %vm1025_vm2, %v2899_v63  ;;  %v1214_v0 = vpop.f32.mrb[1].mxu0 }
 0x5b0   : > { %1223 = vst.msk [vmem:[#allocation3] sm:$0xff] %vm1025_vm2, %v1214_v0 }
 0x5e3   : > { %v3626_v1 = vpop.f32.mrb[2].mxu0 }
 0x5e4   : > { %v3628_v2 = vpop.f32.mrb[3].mxu0 }
 0x5eb   : > { %v2920_v3 = vpop.f32.mrb[4].mxu0 }
 0x5ec   : > { %v1532_v4 = vmul.f32 0.35355338, %v2920_v3  ;;  %v1522_v5 = vpop.f32.mrb[5].mxu0 }
 0x5ed   : > { %v1531_v6 = vmul.f32 0.35355338, %v1522_v5 }
 0x5ee   : > { %v1534_v7 = vadd.f32 %v1532_v4, %v3590_v56 }
 0x5ef   : > { %v1533_v8 = vadd.f32 %v1531_v6, %v3595_v59 }
 0x5f0   : > { %v1538_v9 = vsel %vm1113_vm4, %v1534_v7, -inf }
 0x5f1   : > { %1539 = vmax.xlane.f32.xlu0 %v1538_v9  ;;  %v1535_v10 = vsel %vm1113_vm4, %v1533_v8, -inf  ;;  %v1872_v9 = vld [vmem:[%s3478_s4] sm:$0xff] }
 0x5f2   : > { %1536 = vmax.xlane.f32.xlu1 %v1535_v10  ;;  %v1873_v10 = vld [vmem:[%s3478_s4 + $0x8] sm:$0xff] }
 0x67e   : > { %v1540_v11 = vpop.xlane.xlu0 %1539 }
 0x67f   : > { %v1542_v12 = vsub.f32 %v1534_v7, %v1540_v11  ;;  %v1537_v13 = vpop.xlane.xlu1 %1536  ;;  %v3060_v11 = vpack.c.bf16 %v1873_v10, %v1872_v9  ;;  %v2777_v10 = vld [vmem:[%s853_s0] ss:$0 sm:$0xff]  ;;  %s3887_s0 = sld [smem:[#allocation21_spill]] (!%p2785_p5) }
 0x680   : > { %v1541_v14 = vsub.f32 %v1533_v8, %v1537_v13  ;;  %v1875_v13 = vld [vmem:[%s3478_s4 + $0x18] sm:$0xff] }
 0x681   : > { %v1545_v15 = vmul.f32 1.442695, %v1542_v12  ;;  %v1874_v12 = vld [vmem:[%s3478_s4 + $0x10] sm:$0xff] }
 0x682   : > { %v1543_v16 = vmul.f32 1.442695, %v1541_v14  ;;  %v3064_v14 = vpack.c.bf16 %v1875_v13, %v1874_v12 }
 0x683   : > { %3207 = vpow2.f32 %v1545_v15 }
 0x684   : > { %3209 = vpow2.f32 %v1543_v16 }
 0x68d   : > { %v3208_v17 = vpop.eup %3207 }
 0x68e   : > { %v3210_v18 = vpop.eup %3209  ;;  %v1550_v19 = vsel %vm1113_vm4, %v3208_v17, 0.0 }
 0x68f   : > { %1551 = vadd.xlane.f32.xlu1 %v1550_v19  ;;  %v1547_v20 = vsel %vm1113_vm4, %v3210_v18, 0.0 }
 0x690   : > { %1548 = vadd.xlane.f32.xlu0 %v1547_v20 }
 0x6a0   : > { %3182 = vrot.lane.b32.xlu1 %v3564_v43, %s3318_s26  ;;  %s3884_s26 = scalar_lea.vmem %s3833_s8, %s3463_s24 }
 0x6a4   : > { %1655 = vrot.lane.b32.xlu1 %v3557_v42, %s3319_s18 }
 0x6a6   : > { %3177 = vrot.lane.b32.xlu0 %v3564_v43, %s3320_s19  ;;  %s3885_s19 = scalar_lea.vmem %s3834_s9, %s3463_s24  ;;  %s3888_s24 = sld [smem:[#allocation20_spill]] (!%p2785_p5) }
 0x6aa   : > { %1657 = vrot.lane.b32.xlu0 %v3555_v40, %s3319_s18  ;;  %s3890_s18 = sld [smem:[#allocation23_spill]] (!%p2785_p5) }
 0x71c   : > { %v1552_v21 = vpop.xlane.xlu1 %1551 }
 0x71d   : > { %3211 = vrcp.f32 %v1552_v21  ;;  %v1549_v22 = vpop.xlane.xlu0 %1548  ;;  %v2772_v21 = vld [vmem:[%s839_s20] ss:$0 sm:$0xff] }
 0x71e   : > { %3213 = vrcp.f32 %v1549_v22 }
 0x720   : > { %v3183_v23 = vpop.permute.xlu1 %3182 }
 0x721   : > { %v3178_v24 = vpop.permute.xlu0 %3177  ;;  %v3185_v25 = vunpack.i.h.bf16 %v3183_v23  ;;  %v3184_v26 = vunpack.i.l.bf16 %v3183_v23 }
 0x722   : > { %v3180_v27 = vunpack.i.h.bf16 %v3178_v24  ;;  %v3179_v28 = vunpack.i.l.bf16 %v3178_v24 }
 0x723   : > { %v3050_v30 = vpack.c.bf16 %v3185_v25, %v3184_v26 }
 0x724   : > { %v3046_v29 = vpack.c.bf16 %v3180_v27, %v3179_v28  ;;  %v1656_v33 = vpop.permute.xlu1 %1655 }
 0x725   : > { %v1658_v34 = vpop.permute.xlu0 %1657 }
 0x726   : > { %3047 = vmatprep.subr.bf16.mxu1 %v3046_v29 }
 0x727   : > { %v3212_v31 = vpop.eup %3211  ;;  %3049 = vmatpush3.bf16.msra.mxu1 %v3046_v29 }
 0x728   : > { %v3214_v42 = vpop.eup %3213  ;;  %3052 = vmatprep.subr.msk.bf16.mxu1 %vm3571_vm3, %v3050_v30  ;;  %v1556_v32 = vmul.f32 %v3212_v31, %v3208_v17 }
 0x729   : > { %v1554_v40 = vmul.f32 %v3214_v42, %v3210_v18 }
 0x72b   : > { %2925 = vmatprep.mubr.msk.f32.mxu1 %vm1113_vm4, %v1554_v40 }
 0x72c   : > { %2926 = vmatmul.mubr.msk.f32.vlgmr.msra.gmra.mrb[6].mxu1 %vm1113_vm4, %v1556_v32 }
 0x72d   : > { %2932 = vmatprep.mubr.msk.f32.mxu1 %vm1025_vm2, %v1656_v33 }
 0x730   : > { %3055 = vmatpush3.bf16.xpose.msk.msra.mxu1 %vm3571_vm3, %v3050_v30 }
 0x737   : > { %2933 = vmatmul.mubr.msk.f32.vlgmr.msra.gmra.mrb[8].mxu1 %vm1025_vm2, %v1658_v34 }
 0x7ff   : > { %v2927_v36 = vpop.f32.mrb[6].mxu1 }
 0x800   : > { %v1635_v38 = vpop.f32.mrb[7].mxu1 }
 0x80a   : > { %v2934_v39 = vpop.f32.mrb[8].mxu1 }
 0x80b   : > { %v1747_v41 = vmul.f32 0.35355338, %v2934_v39  ;;  %v1737_v44 = vpop.f32.mrb[9].mxu1  ;;  %v2012_v39 = vld [vmem:[%s3495_s7 + $0x8] sm:$0xff] }
 0x80c   : > { %v1746_v45 = vmul.f32 0.35355338, %v1737_v44  ;;  %v2013_v44 = vld [vmem:[%s3495_s7 + $0x10] sm:$0xff] }
 0x80d   : > { %v1749_v46 = vadd.f32 %v1747_v41, %v3590_v56 }
 0x80e   : > { %v1748_v48 = vadd.f32 %v1746_v45, %v3595_v59  ;;  %v2014_v45 = vld [vmem:[%s3495_s7 + $0x18] sm:$0xff] }
 0x80f   : > { %v1753_v49 = vsel %vm1113_vm4, %v1749_v46, -inf }
 0x810   : > { %1754 = vmax.xlane.f32.xlu0 %v1753_v49  ;;  %v1750_v50 = vsel %vm1113_vm4, %v1748_v48, -inf }
 0x811   : > { %1751 = vmax.xlane.f32.xlu1 %v1750_v50 }
 0x89d   : > { %v1755_v47 = vpop.xlane.xlu0 %1754 }
 0x89e   : > { %v1757_v51 = vsub.f32 %v1749_v46, %v1755_v47  ;;  %v1752_v52 = vpop.xlane.xlu1 %1751  ;;  %v3072_v46 = vpack.c.bf16 %v2014_v45, %v2013_v44 }
 0x89f   : > { %v1756_v53 = vsub.f32 %v1748_v48, %v1752_v52 }
 0x8a0   : > { %v1760_v54 = vmul.f32 1.442695, %v1757_v51 }
 0x8a1   : > { %v1758_v55 = vmul.f32 1.442695, %v1756_v53 }
 0x8a2   : > { %3215 = vpow2.f32 %v1760_v54  ;;  %v2775_v54 = vld [vmem:[%s3884_s26] ss:$0 sm:$0xff] }
 0x8a3   : > { %3217 = vpow2.f32 %v1758_v55 }
 0x8ac   : > { %v3216_v57 = vpop.eup %3215 }
 0x8ad   : > { %v3218_v58 = vpop.eup %3217  ;;  %v1765_v56 = vsel %vm1113_vm4, %v3216_v57, 0.0 }
 0x8ae   : > { %1766 = vadd.xlane.f32.xlu1 %v1765_v56  ;;  %v1762_v59 = vsel %vm1113_vm4, %v3218_v58, 0.0 }
 0x8af   : > { %1763 = vadd.xlane.f32.xlu0 %v1762_v59 }
 0x8bf   : > { %1431 = vrot.lane.b32.xlu1 %v3628_v2, %s3321_s1 }
 0x8c3   : > { %1433 = vrot.lane.b32.xlu1 %v3626_v1, %s3321_s1 }
 0x8c5   : > { %3187 = vrot.lane.b32.xlu0 %v3564_v43, %s3322_s27 }
 0x8c7   : > { %1648 = vrot.lane.b32.xlu1 %v2927_v36, %s3323_s29 }
 0x8c9   : > { %1646 = vrot.lane.b32.xlu0 %v1635_v38, %s3323_s29  ;;  %v2011_v38 = vld [vmem:[%s3495_s7] sm:$0xff] }
 0x8ca   : > { %v3068_v41 = vpack.c.bf16 %v2012_v39, %v2011_v38 }
 0x8cc   : > { %3069 = vmatprep.subr.bf16.mxu1 %v3068_v41 }
 0x8cd   : > { %3071 = vmatpush3.bf16.msra.mxu1 %v3068_v41 }
 0x8ce   : > { %3073 = vmatprep.subr.bf16.mxu1 %v3072_v46 }
 0x8d1   : > { %3075 = vmatpush3.bf16.msra.mxu1 %v3072_v46 }
 0x93b   : > { %v1767_v60 = vpop.xlane.xlu1 %1766 }
 0x93c   : > { %3219 = vrcp.f32 %v1767_v60  ;;  %v1764_v61 = vpop.xlane.xlu0 %1763 }
 0x93d   : > { %3221 = vrcp.f32 %v1764_v61 }
 0x93f   : > { %v1432_v62 = vpop.permute.xlu1 %1431 }
 0x940   : > { %1438 = vst.msk [vmem:[#allocation3] sm:$0xff] %vm1437_vm5, %v1432_v62  ;;  %v3188_v63 = vpop.permute.xlu0 %3187 }
 0x941   : > { %v3190_v0 = vunpack.i.h.bf16 %v3188_v63  ;;  %v3189_v3 = vunpack.i.l.bf16 %v3188_v63  ;;  %v2121_v63 = vld [vmem:[%s3505_s23] sm:$0xff] }
 0x943   : > { %v3056_v2 = vpack.c.bf16 %v3190_v0, %v3189_v3  ;;  %v1434_v1 = vpop.permute.xlu1 %1433  ;;  %v2122_v0 = vld [vmem:[%s3505_s23 + $0x8] sm:$0xff] }
 0x944   : > { %1439 = vst.msk [vmem:[#allocation3 + $0x8] sm:$0xff] %vm1437_vm5, %v1434_v1  ;;  %v1647_v43 = vpop.permute.xlu0 %1646  ;;  %v3076_v3 = vpack.c.bf16 %v2122_v0, %v2121_v63  ;;  %v2124_v1 = vld [vmem:[%s3505_s23 + $0x18] sm:$0xff]  ;;  %v2784_v63 = vld [vmem:[%s867_s16] ss:$0 sm:$0xff] }
 0x945   : > { %1653 = vst.msk [vmem:[#allocation3] sm:$0xff] %vm1652_vm6, %v1647_v43  ;;  %3057 = vmatprep.subr.bf16.mxu0 %v3056_v2 }
 0x946   : > { %v3220_v4 = vpop.eup %3219  ;;  %3059 = vmatpush3.bf16.msra.mxu0 %v3056_v2  ;;  %v2123_v2 = vld [vmem:[%s3505_s23 + $0x10] sm:$0xff] }
 0x947   : > { %v3222_v5 = vpop.eup %3221  ;;  %v1649_v6 = vpop.permute.xlu1 %1648  ;;  %v1771_v8 = vmul.f32 %v3220_v4, %v3216_v57  ;;  %3061 = vmatprep.subr.bf16.mxu0 %v3060_v11  ;;  %v2776_v57 = vld [vmem:[%s3885_s19] ss:$0 sm:$0xff]  ;;  %v3080_v43 = vpack.c.bf16 %v2124_v1, %v2123_v2  ;;  %s3886_s19 = sld [smem:[#allocation19_spill]] (!%p2785_p5) }
 0x948   : > { %1654 = vst.msk [vmem:[#allocation3 + $0x8] sm:$0xff] %vm1652_vm6, %v1649_v6  ;;  %v1769_v7 = vmul.f32 %v3222_v5, %v3218_v58  ;;  %v2125_v4 = vld [vmem:[%s3505_s23 + $0x20] sm:$0xff]  ;;  %v2126_v5 = vld [vmem:[%s3505_s23 + $0x28] sm:$0xff] }
 0x949   : > { %v3084_v6 = vpack.c.bf16 %v2126_v5, %v2125_v4  ;;  %v2344_v5 = vld [vmem:[%s3842_s17] sm:$0xff] (!%p2785_p5) }
 0x94a   : > { %2939 = vmatprep.mubr.msk.f32.mxu0 %vm1113_vm4, %v1769_v7  ;;  %v2127_v7 = vld [vmem:[%s3505_s23 + $0x30] sm:$0xff] }
 0x94b   : > { %2940 = vmatmul.mubr.msk.f32.vlgmr.msra.gmra.mrb[6].mxu0 %vm1113_vm4, %v1771_v8  ;;  %v2128_v8 = vld [vmem:[%s3505_s23 + $0x38] sm:$0xff] }
 0x94c   : > { %3063 = vmatpush3.bf16.msra.mxu0 %v3060_v11  ;;  %v3088_v9 = vpack.c.bf16 %v2128_v8, %v2127_v7  ;;  %v3327_v7 = vmov (!%p2785_p5), 0.0   ;;  %v2345_v8 = vld [vmem:[%s3842_s17 + $0x8] sm:$0xff] (!%p2785_p5) }
 0x94d   : > { %3065 = vmatprep.subr.bf16.mxu0 %v3064_v14 }
 0x950   : > { %3067 = vmatpush3.bf16.msra.mxu0 %v3064_v14 }
 0x951   : > { %3077 = vmatprep.subr.bf16.mxu0 %v3076_v3 }
 0xa1e   : > { %v2941_v15 = vpop.f32.mrb[6].mxu0 }
 0xa1f   : > { %1863 = vrot.lane.b32.xlu1 %v2941_v15, %s3324_s3  ;;  %v1850_v16 = vpop.f32.mrb[7].mxu0 }
 0xa20   : > { %1861 = vrot.lane.b32.xlu0 %v1850_v16, %s3324_s3 }
 0xa91   : > { %v1864_v17 = vpop.permute.xlu1 %1863 }
 0xa92   : > { %1869 = vst.msk [vmem:[#allocation3 + $0x8] sm:$0xff] %vm1867_vm7, %v1864_v17  ;;  %v1862_v18 = vpop.permute.xlu0 %1861 }
 0xa93   : > { %1868 = vst.msk [vmem:[#allocation3] sm:$0xff] %vm1867_vm7, %v1862_v18 }
 0xa99   : > { %v1871_v20 = vld [vmem:[#allocation3 + $0x8] sm:$0xff] }
 0xa9a   : > { %v1870_v19 = vld [vmem:[#allocation3] sm:$0xff] }
 0xa9b   : > { %2950 = vmatprep.mubr.msk.f32.mxu0 %vm935_vm1, %v1870_v19 }
 0xa9c   : > { %2951 = vmatmul.mubr.msk.f32.vlgmr.msra.gmra.mrb[8].mxu0 %vm935_vm1, %v1871_v20 }
 0xa9d   : > { %3079 = vmatpush3.bf16.msra.mxu0 %v3076_v3 }
 0xa9e   : > { %3081 = vmatprep.subr.bf16.mxu0 %v3080_v43 }
 0xaa1   : > { %3083 = vmatpush3.bf16.msra.mxu0 %v3080_v43 }
 0xaa2   : > { %3085 = vmatprep.subr.bf16.mxu0 %v3084_v6 }
 0xaa5   : > { %3087 = vmatpush3.bf16.msra.mxu0 %v3084_v6  ;;  %v3325_v6 = vmov (!%p2785_p5), 0.0|0.0  }
 0xaa6   : > { %3089 = vmatprep.subr.bf16.mxu0 %v3088_v9  ;;  %3095 = vmatprep.subr.bf16.mxu1 (!%p2785_p5), %v3325_v6 }
 0xaa9   : > { %3091 = vmatpush3.bf16.msra.mxu0 %v3088_v9  ;;  %v2346_v9 = vld [vmem:[%s3842_s17 + $0x10] sm:$0xff] (!%p2785_p5) }
 0xaaa   : > { %3092 = vmatprep.subr.bf16.mxu0 (!%p2785_p5), %v3325_v6 }
 0xb6f   : > { %v2952_v22 = vpop.f32.mrb[8].mxu0 }
 0xb70   : > { %v1961_v23 = vadd.f32 %v2952_v22, %v2772_v21  ;;  %v1955_v24 = vpop.f32.mrb[9].mxu0 }
 0xb71   : > { %v1956_v25 = vadd.f32 %v2772_v21, %v1955_v24 }
 0xb72   : > { %v1965_v26 = vadd.f32 %v1961_v23, %v3546_v37 }
 0xb73   : > { %v1964_v27 = vadd.f32 %v1956_v25, %v3542_v35 }
 0xb74   : > { %v1971_v28 = vsel %vm935_vm1, %v1965_v26, 0.0 }
 0xb75   : > { %1972 = vadd.xlane.f32.xlu1 %v1971_v28  ;;  %v1968_v29 = vsel %vm935_vm1, %v1964_v27, 0.0 }
 0xb76   : > { %1969 = vadd.xlane.f32.xlu0 %v1968_v29 }
 0xc02   : > { %v1973_v30 = vpop.xlane.xlu1 %1972 }
 0xc03   : > { %v1976_v31 = vmul.f32 0.03125, %v1973_v30  ;;  %v1970_v42 = vpop.xlane.xlu0 %1969 }
 0xc04   : > { %v1975_v40 = vmul.f32 0.03125, %v1970_v42 }
 0xc05   : > { %v1978_v32 = vsub.f32 %v1965_v26, %v1976_v31 }
 0xc06   : > { %v1977_v33 = vsub.f32 %v1964_v27, %v1975_v40  ;;  %v2780_v40 = vld [vmem:[%s861_s5] ss:$0 sm:$0xff] }
 0xc07   : > { %v1980_v35 = vmul.f32 %v1978_v32, %v1978_v32 }
 0xc08   : > { %v1979_v34 = vmul.f32 %v1977_v33, %v1977_v33 }
 0xc09   : > { %v1984_v36 = vsel %vm935_vm1, %v1980_v35, 0.0 }
 0xc0a   : > { %v1981_v37 = vsel %vm935_vm1, %v1979_v34, 0.0 }
 0xc0b   : > { %1982 = vadd.xlane.f32.xlu0 %v1981_v37 }
 0xc0f   : > { %1985 = vadd.xlane.f32.xlu0 %v1984_v36 }
 0xc98   : > { %v1983_v48 = vpop.xlane.xlu0 %1982 }
 0xc99   : > { %v1987_v49 = vmul.f32 0.03125, %v1983_v48 }
 0xc9b   : > { %v1989_v50 = vadd.f32 1e-12, %v1987_v49 }
 0xc9c   : > { %v1986_v47 = vpop.xlane.xlu0 %1985 }
 0xc9d   : > { %3223 = vrsqrt.f32 %v1989_v50  ;;  %v1988_v51 = vmul.f32 0.03125, %v1986_v47 }
 0xc9f   : > { %v1990_v52 = vadd.f32 1e-12, %v1988_v51 }
 0xca1   : > { %3225 = vrsqrt.f32 %v1990_v52 }
 0xca7   : > { %v3224_v53 = vpop.eup %3223 }
 0xca8   : > { %v1993_v55 = vmul.f32 %v3224_v53, %v1977_v33 }
 0xcaa   : > { %v2001_v58 = vmul.f32 %v2775_v54, %v1993_v55 }
 0xcab   : > { %v3226_v56 = vpop.eup %3225 }
 0xcac   : > { %v1994_v59 = vmul.f32 %v3226_v56, %v1978_v32  ;;  %v2009_v60 = vadd.f32 %v2776_v57, %v2001_v58 }
 0xcae   : > { %v2002_v61 = vmul.f32 %v2775_v54, %v1994_v59  ;;  %2961 = vmatprep.mubr.msk.f32.mxu1 %vm935_vm1, %v2009_v60 }
 0xcb0   : > { %v2010_v62 = vadd.f32 %v2776_v57, %v2002_v61 }
 0xcb2   : > { %2962 = vmatmul.mubr.msk.f32.vlgmr.msra.gmra.mrb[10].mxu1 %vm935_vm1, %v2010_v62 }
 0xcb3   : > { %2998 = vmatprep.mubr.msk.f32.mxu1 (!%p2785_p5), %vm3326_vm9, %v3327_v7 }
 0xd85   : > { %v2963_v11 = vpop.f32.mrb[10].mxu1 }
 0xd86   : > { %v2100_v12 = vadd.f32 %v2963_v11, %v2777_v10  ;;  %v2094_v13 = vpop.f32.mrb[11].mxu1  ;;  %v2270_v11 = vld [vmem:[%s3886_s19] sm:$0x3] (!%p2785_p5) }
 0xd87   : > { %v2095_v14 = vadd.f32 %v2777_v10, %v2094_v13  ;;  %v2347_v10 = vld [vmem:[%s3842_s17 + $0x18] sm:$0xff] (!%p2785_p5) }
 0xd88   : > { %v2106_v15 = vmul.f32 0.044715, %v2100_v12  ;;  %v2104_v30 = vmul.f32 0.5, %v2100_v12  ;;  %v3099_v13 = vpack.c.bf16 (!%p2785_p5), %v2347_v10, %v2346_v9 }
 0xd89   : > { %v2105_v16 = vmul.f32 0.044715, %v2095_v14  ;;  %v2103_v28 = vmul.f32 0.5, %v2095_v14 }
 0xd8a   : > { %v2108_v17 = vmul.f32 %v2106_v15, %v2100_v12 }
 0xd8b   : > { %v2107_v18 = vmul.f32 %v2105_v16, %v2095_v14  ;;  %v2429_v16 = vld [vmem:[%s3887_s0] sm:$0xff] (!%p2785_p5) }
 0xd8c   : > { %v2110_v19 = vmul.f32 %v2108_v17, %v2100_v12  ;;  %v2430_v17 = vld [vmem:[%s3887_s0 + $0x8] sm:$0xff] (!%p2785_p5) }
 0xd8d   : > { %v2109_v20 = vmul.f32 %v2107_v18, %v2095_v14  ;;  %v2431_v18 = vld [vmem:[%s3887_s0 + $0x10] sm:$0xff] (!%p2785_p5) }
 0xd8e   : > { %v2112_v21 = vadd.f32 %v2110_v19, %v2100_v12  ;;  %v3096_v12 = vpack.c.bf16 (!%p2785_p5), %v2345_v8, %v2344_v5  ;;  %v3102_v19 = vpack.c.bf16 (!%p2785_p5), %v2430_v17, %v2429_v16 }
 0xd8f   : > { %v2111_v22 = vadd.f32 %v2109_v20, %v2095_v14  ;;  %v2432_v20 = vld [vmem:[%s3887_s0 + $0x18] sm:$0xff] (!%p2785_p5) }
 0xd90   : > { %v2114_v23 = vmul.f32 0.7978846, %v2112_v21  ;;  %3097 = vmatpush3.bf16.msra.mxu1 (!%p2785_p5), %v3096_v12  ;;  %v3105_v21 = vpack.c.bf16 (!%p2785_p5), %v2432_v20, %v2431_v18 }
 0xd91   : > { %v2113_v24 = vmul.f32 0.7978846, %v2111_v22  ;;  %3098 = vmatprep.subr.bf16.mxu1 (!%p2785_p5), %v3325_v6  ;;  %v2787_v22 = vld [vmem:[%s3888_s24] ss:$0 sm:$0xff] (!%p2785_p5) }
 0xd92   : > { %3227 = vtanh.f32 %v2114_v23 }
 0xd93   : > { %3229 = vtanh.f32 %v2113_v24 }
 0xd94   : > { %3100 = vmatpush3.bf16.msra.mxu1 (!%p2785_p5), %v3099_v13 }
 0xd9c   : > { %v3228_v25 = vpop.eup %3227 }
 0xd9d   : > { %v3230_v26 = vpop.eup %3229  ;;  %v2118_v27 = vadd.f32 1.0, %v3228_v25 }
 0xd9e   : > { %v2117_v29 = vadd.f32 1.0, %v3230_v26 }
 0xd9f   : > { %v2120_v42 = vmul.f32 %v2118_v27, %v2104_v30  ;;  %v2789_v27 = vld [vmem:[%s3889_s28] ss:$0 sm:$0xff] (!%p2785_p5) }
 0xda0   : > { %v2119_v31 = vmul.f32 %v2117_v29, %v2103_v28 }
 0xda2   : > { %2980 = vmatprep.mubr.msk.f32.mxu0 %vm2136_vm8, %v2119_v31 }
 0xda3   : > { %2981 = vmatmul.mubr.msk.f32.vlgmr.msra.gmra.mrb[10].mxu0 %vm2136_vm8, %v2120_v42  ;;  %v2529_v42 = vld [vmem:[%s3890_s18] sm:$0x3] (!%p2785_p5) }
 0xda4   : > { %2987 = vmatprep.mubr.msk.f32.mxu0 (!%p2785_p5), %vm3326_vm9, %v3327_v7 }
 0xe76   : > { %v2982_v32 = vpop.f32.mrb[10].mxu0 }
 0xe77   : > { %v2215_v33 = vadd.f32 %v2982_v32, %v2780_v40  ;;  %v2209_v34 = vpop.f32.mrb[11].mxu0 }
 0xe78   : > { %v2210_v37 = vadd.f32 %v2780_v40, %v2209_v34  ;;  %v3328_v40 = vmov (!%p2785_p5), 0  }
 0xe79   : > { %v2219_v35 = vadd.f32 %v2215_v33, %v2010_v62  ;;  %3235 = vset.pattern.permute.xlu1 (!%p2785_p5), %v3328_v40  ;;  %3236 = vset.pattern.permute.xlu0 (!%p2785_p5), %v3328_v40 }
 0xe7a   : > { %v2218_v36 = vadd.f32 %v2210_v37, %v2009_v60  ;;  %v2783_v60 = vld [vmem:[%s864_s6] ss:$0 sm:$0xff] }
 0xe7b   : > { %v2225_v38 = vsel %vm935_vm1, %v2219_v35, 0.0 }
 0xe7c   : > { %2226 = vadd.xlane.f32.xlu0 %v2225_v38  ;;  %v2222_v39 = vsel %vm935_vm1, %v2218_v36, 0.0  ;;  %v2527_v38 = vlaneseq (!%p2785_p5) }
 0xe7d   : > { %2223 = vadd.xlane.f32.xlu1 %v2222_v39 }
 0xe7e   : > { %v2528_v39 = vand.u32 (!%p2785_p5), 127, %v2527_v38 }
 0xf09   : > { %v2227_v41 = vpop.xlane.xlu0 %2226 }
 0xf0a   : > { %v2229_v44 = vmul.f32 0.03125, %v2227_v41  ;;  %v2224_v45 = vpop.xlane.xlu1 %2223 }
 0xf0b   : > { %v2228_v46 = vmul.f32 0.03125, %v2224_v45 }
 0xf0c   : > { %v2231_v48 = vsub.f32 %v2219_v35, %v2229_v44 }
 0xf0d   : > { %v2230_v49 = vsub.f32 %v2218_v36, %v2228_v46 }
 0xf0e   : > { %v2233_v50 = vmul.f32 %v2231_v48, %v2231_v48 }
 0xf0f   : > { %v2232_v47 = vmul.f32 %v2230_v49, %v2230_v49 }
 0xf10   : > { %v2237_v51 = vsel %vm935_vm1, %v2233_v50, 0.0 }
 0xf11   : > { %2238 = vadd.xlane.f32.xlu0 %v2237_v51  ;;  %v2234_v52 = vsel %vm935_vm1, %v2232_v47, 0.0 }
 0xf12   : > { %2235 = vadd.xlane.f32.xlu1 %v2234_v52 }
 0xf23   : > { %2531 = vperm.xlu1 (!%p2785_p5), %3235, %v2529_v42  }
 0xf9e   : > { %v2239_v53 = vpop.xlane.xlu0 %2238 }
 0xf9f   : > { %v2241_v54 = vmul.f32 0.03125, %v2239_v53  ;;  %v2236_v55 = vpop.xlane.xlu1 %2235 }
 0xfa0   : > { %v2240_v57 = vmul.f32 0.03125, %v2236_v55 }
 0xfa1   : > { %v2243_v58 = vadd.f32 1e-12, %v2241_v54 }
 0xfa2   : > { %v2242_v56 = vadd.f32 1e-12, %v2240_v57 }
 0xfa3   : > { %3231 = vrsqrt.f32 %v2243_v58  ;;  %v2532_v41 = vpop.permute.xlu1 (!%p2785_p5), %2531 }
 0xfa4   : > { %3233 = vrsqrt.f32 %v2242_v56  ;;  %vm2533_vm11 = vcmp.eq.s32.totalorder (!%p2785_p5), %v2528_v39, %v2532_v41 }
 0xfad   : > { %v3232_v59 = vpop.eup %3231 }
 0xfae   : > { %v3234_v61 = vpop.eup %3233  ;;  %v2247_v62 = vmul.f32 %v3232_v59, %v2231_v48  ;;  %v2791_v48 = vsel (!%p2785_p5), %vm2533_vm11, 1.0, %v3327_v7 }
 0xfaf   : > { %v2246_v0 = vmul.f32 %v3234_v61, %v2230_v49  ;;  %2269 = sbr.rel (%p2785_p5) target bundleno = 5158 (0x1426), region = 116 }
 0xfb0   : > { %v2255_v3 = vmul.f32 %v2783_v60, %v2247_v62 }
 0xfb1   : > { %v2254_v2 = vmul.f32 %v2783_v60, %v2246_v0 }
 0xfb2   : > { %v2263_v1 = vadd.f32 %v2784_v63, %v2255_v3 }
 0xfb3   : > { %v2262_v43 = vadd.f32 %v2784_v63, %v2254_v2 }
 0xfb4   : > { %2265 = vst.msk [vmem:[#allocation2 + $0x8] sm:$0xff] %vm935_vm1, %v2263_v1 }
 0xfb5   : > { %2264 = vst.msk [vmem:[#allocation2] sm:$0xff] %vm935_vm1, %v2262_v43  ;;  %v3093_v4 = vpack.c.bf16 (!%p2785_p5), %v2263_v1, %v2262_v43 }
 0xfb7   : > { %3094 = vmatpush3.bf16.msra.mxu0 %v3093_v4 }
 0xfb8   : > { %3101 = vmatprep.subr.bf16.mxu0 %v3325_v6 }
 0xfba   : > { %2988 = vmatmul.mubr.msk.f32.vlgmr.msra.gmra.mrb[0].mxu0 %vm1113_vm4, %v2270_v11 }
 0xfbb   : > { %3009 = vmatprep.mubr.msk.f32.mxu0 %vm3326_vm9, %v3327_v7  ;;  %3103 = vmatpush3.bf16.msra.mxu0 %v3102_v19 }
 0xfbc   : > { %3104 = vmatprep.subr.bf16.mxu0 %v3325_v6 }
 0xfbf   : > { %3106 = vmatpush3.bf16.msra.mxu0 %v3105_v21 }
0x108d   : > { %v2340_v14 = vpop.f32.mrb[0].mxu0 }
0x108e   : > { %v2989_v15 = vpop.f32.mrb[1].mxu0  ;;  %2999 = vmatmul.mubr.msk.f32.vlgmr.msra.gmra.mrb[0].mxu1 %vm935_vm1, %v2340_v14 }
0x1161   : > { %v2424_v23 = vpop.f32.mrb[0].mxu1 }
0x1162   : > { %v2425_v24 = vadd.f32 %v2787_v22, %v2424_v23  ;;  %v3000_v25 = vpop.f32.mrb[1].mxu1 }
0x1164   : > { %3237 = vtanh.f32 %v2425_v24 }
0x116e   : > { %v3238_v26 = vpop.eup %3237 }
0x116f   : > { %3010 = vmatmul.mubr.msk.f32.vlgmr.msra.gmra.mrb[2].mxu0 %vm935_vm1, %v3238_v26 }
0x1242   : > { %v2509_v28 = vpop.f32.mrb[2].mxu0 }
0x1243   : > { %v2510_v29 = vadd.f32 %v2789_v27, %v2509_v28  ;;  %v3011_v30 = vpop.f32.mrb[3].mxu0 }
0x1245   : > { %v2515_v31 = vsel %vm2513_vm10, %v2510_v29, -inf  ;;  %2514 = vst.msk [vmem:[#allocation4] sm:$0x3] %vm2513_vm10, %v2510_v29 }
0x1246   : > { %2516 = vmax.xlane.f32.xlu0 %v2515_v31 }
0x12d3   : > { %v2517_v32 = vpop.xlane.xlu0 %2516 }
0x12d4   : > { %v2518_v33 = vsub.f32 %v2510_v29, %v2517_v32 }
0x12d6   : > { %v2519_v34 = vmul.f32 1.442695, %v2518_v33 }
0x12d8   : > { %3239 = vpow2.f32 %v2519_v34 }
0x12e2   : > { %v3240_v37 = vpop.eup %3239 }
0x12e3   : > { %v2521_v35 = vsel %vm2513_vm10, %v3240_v37, 0.0 }
0x12e4   : > { %2522 = vadd.xlane.f32.xlu0 %v2521_v35 }
0x1371   : > { %v2523_v36 = vpop.xlane.xlu0 %2522 }
0x1372   : > { %3241 = vlog2.f32 %v2523_v36 }
0x137c   : > { %v3242_v44 = vpop.eup %3241 }
0x137d   : > { %v2525_v45 = vmul.f32 0.6931472, %v3242_v44 }
0x137f   : > { %v2526_v46 = vadd.f32 %v2525_v45, %v2517_v32 }
0x1381   : > { %v2536_v49 = vsub.f32 %v2510_v29, %v2526_v46 }
0x1383   : > { %v2537_v50 = vmul.f32 %v2791_v48, %v2536_v49 }
0x1385   : > { %v2538_v47 = vsel %vm2513_vm10, %v2537_v50, 0.0 }
0x1386   : > { %2539 = vadd.xlane.f32.xlu1 %v2538_v47 }
0x1413   : > { %v2540_v51 = vpop.xlane.xlu1 %2539 }
0x1414   : > { %v2541_v52 = vsub.f32 0.0, %v2540_v51 }
0x1416   : > { %v2543_v53 = vsel %vm2542_vm12, %v2541_v52, 0.0 }
0x1417   : > { %v2544_v54 = vrot.slane %v2543_v53, 4 }
0x1419   : > { %v2545_v55 = vadd.f32 %v2544_v54, %v2543_v53 }
0x141b   : > { %v2546_v57 = vrot.slane %v2545_v55, 2 }
0x141d   : > { %v2547_v58 = vadd.f32 %v2546_v57, %v2545_v55 }
0x141f   : > { %v2548_v56 = vrot.slane %v2547_v58, 1 }
0x1421   : > { %v2549_v59 = vadd.f32 %v2548_v56, %v2547_v58 }
0x1423   : > { %v2551_v60 = vmul.f32 0.5, %v2549_v59 }
0x1425   : > { %2553 = vst.msk [vmem:[#allocation6] sm:$0x1] %vm2552_vm13, %v2551_v60 }
0x1426 PF: > { %p3115_p6 = scmp.eq.s32.totalorder %s3457_s30, 1  ;;  %s3329_s19 = smov [#allocation4]  }
0x1427   : > { %s2561_s1 = sshll.u32 %s3329_s19, 4  ;;  %s3330_s27 = smov [#allocation6]   ;;  %s2562_s1 = int_to_ptr.vmem [resolvable:$true] %s2561_s1 }
0x1428   : > { %s2572_s23 = sshll.u32 %s3330_s27, 4  ;;  %s3243_s5 = scalar_lea.vmem %s2562_s1, 32  ;;  %s2573_s23 = int_to_ptr.vmem [resolvable:$true] %s2572_s23 }
0x1429   : > { %p3244_p7 = scmp.ne.s32.totalorder %s2562_s1, %s3243_s5  ;;  %p3250_p10 = scmp.lt.s32.totalorder %s2562_s1, %s2562_s1 }
0x142a   : > { %p3251_p11 = scmp.lt.s32.totalorder %s3243_s5, %s3243_s5 }
0x142b   : > { %p3245_p8 = pnand %p3244_p7, %p3115_p6 }
0x142c   : > { %p3252_p12 = por %p3251_p11, %p3250_p10 }
0x142d   : > { %p3246_p9 = pneg %p3245_p8 }
0x142f   : > { %p3253_p13 = pnand %p3252_p12, %p3246_p9 }
0x1431   : > { %3256 = shalt.err (!%p3253_p13)
}
0x1432   : > { %s3891_s4 = sld [smem:[#allocation24_spill]] }
0x1438   : > { %s3892_s6 = smov %s3891_s4  ;;  %s3257_s2 = scalar_lea.hbm %s3891_s4, 32 }
0x1439   : > { %p3258_p0 = scmp.ne.s32.totalorder %s3892_s6, %s3257_s2  ;;  %p3263_p3 = scmp.lt.u32.totalorder %s3257_s2, %s3892_s6 }
0x143b   : > { %p3259_p1 = pnand %p3258_p0, %p3115_p6 }
0x143d   : > { %p3260_p2 = pneg %p3259_p1 }
0x143f   : > { %p3265_p4 = pnand %p3263_p3, %p3260_p2 }
0x1441   : > { %3268 = shalt.err (!%p3265_p4)
}
0x1442   : > { %3108 = dma.vmem_to_hbm [thread:$0]  (%p3115_p6), %s2562_s1, 32, %s3892_s6, [#allocation5]  }
0x1443   : > { %s3269_s7 = scalar_lea.vmem %s2573_s23, 16  ;;  %s3275_s18 = scalar_lea.vmem %s2573_s23, 32 }
0x1444   : > { %p3270_p5 = scmp.ne.s32.totalorder %s2573_s23, %s3269_s7  ;;  %p3276_p9 = scmp.lt.s32.totalorder %s2573_s23, %s2573_s23 }
0x1445   : > { %p3277_p10 = scmp.lt.s32.totalorder %s3275_s18, %s3269_s7 }
0x1446   : > { %p3271_p7 = pnand %p3270_p5, %p3115_p6 }
0x1447   : > { %p3278_p11 = por %p3277_p10, %p3276_p9 }
0x1448   : > { %p3272_p8 = pneg %p3271_p7 }
0x144a   : > { %p3279_p12 = pnand %p3278_p11, %p3272_p8 }
0x144c   : > { %3282 = shalt.err (!%p3279_p12)
}
0x144d   : > { %s3893_s5 = sld [smem:[#allocation25_spill]] }
0x1453   : > { %s3283_s29 = scalar_lea.hbm %s3893_s5, 16 }
0x1454   : > { %p3284_p13 = scmp.ne.s32.totalorder %s3893_s5, %s3283_s29  ;;  %p3289_p2 = scmp.lt.u32.totalorder %s3283_s29, %s3893_s5 }
0x1456   : > { %p3285_p0 = pnand %p3284_p13, %p3115_p6 }
0x1458   : > { %p3286_p1 = pneg %p3285_p0 }
0x145a   : > { %p3291_p3 = pnand %p3289_p2, %p3286_p1 }
0x145c   : > { %3294 = shalt.err (!%p3291_p3)
}
0x145d   : > { %3110 = dma.vmem_to_hbm [thread:$0]  (%p3115_p6), %s2573_s23, 16, %s3893_s5, [#allocation7]  }
0x145e   : > { %3300 = dma.done.wait (%p3115_p6), [#allocation5], 32  }
0x145f   : > { %3302 = vsyncadd (%p3115_p6), [#allocation5], 4294967264 }
0x1460   : > { %3304 = dma.done.wait (%p3115_p6), [#allocation7], 16  }
0x1461   : > { %3306 = vsyncadd (%p3115_p6), [#allocation7], 4294967280 }
0x1462 PF: > { %s3894_s21 = sld [smem:[#allocation10_spill]] }
0x1468   : > { %s36_s4 = sadd.s32 1, %s3894_s21  }
0x1469   : > { %p33_p4 = scmp.ge.s32.totalorder %s36_s4, 4  }
0x146b   :  { %35 = sbr.rel (!%p33_p4) target bundleno = 18 (0x12), region = 184 }
0x1472   :  { %2589 = vsyncpa [#allocation5], 1 }
0x1473   :  { %2591 = vsyncpa [#allocation5 + $0x1], 1 }
0x1474   :  { %2592 = vsyncpa [#allocation7], 1 }

</bundles_post_ra>
